<compile_context>
chip_gen: v6e
topology: v6e:2x2x1
jax: 0.10.0
libtpu: 0.0.40
codegen_flags: <defaults>
</compile_context>

<pallas_src>
import math
from functools import partial

import jax
import jax.numpy as jnp
from jax.experimental import pallas as pl
from jax.experimental.pallas import tpu as pltpu

JOINT_RANGES = [
    [-3.14158, 3.14158], [-1.85005, 1.25664], [-1.76278, 1.6057],
    [-3.14158, 3.14158], [-1.8675, 2.23402], [-3.14158, 3.14158],
    [0.0, 1.0], [-3.14158, 3.14158], [-3.14158, 3.14158],
    [-1.85005, 1.25664], [-1.76278, 1.6057], [-3.14158, 3.14158],
    [-1.8675, 2.23402], [0.0, 1.0],
]
ACTION_DIM = len(JOINT_RANGES)   # 14
FEAT_DIM = 512
OUT_PAD = 128                    # lane-dense output width (multiple of 128)
B_PAD_MULT = 16                  # bf16 LHS tile is (16, 128) -> pad batch to 16
K_ALIGN = 512                    # K tiles are multiples of 512 lanes


def _round_up(x, m):
    return ((x + m - 1) // m) * m


def _default_tk(k_dim):
    """Generation-aware K-tile: ~8 MiB bf16 wf tiles on 64 MiB VMEM (v7x),
    ~16 MiB tiles on 128 MiB VMEM (v5e/v6e)."""
    try:
        vmem_cap = pltpu.get_tpu_info().vmem_capacity_bytes
    except Exception:  # pragma: no cover - conservative fallback
        vmem_cap = 64 << 20
    cap = 16384 if vmem_cap >= (100 << 20) else 8192
    return min(_round_up(k_dim, K_ALIGN), cap)


def _bc_policy_kernel(x_ref,                  # (B_pad, TK)   bf16, streamed over K
                      wf_ref,                 # (TK, 512)     bf16, streamed over K
                      bf_ref,                 # (1, 512)      f32, resident
                      w0_ref, b0_ref,         # (512, 512) bf16 / (1, 512) f32, resident
                      w1_ref, b1_ref,         # (512, 512) bf16 / (1, 512) f32, resident
                      w2_ref, b2_ref,         # (512, 256) bf16 / (1, 256) f32, resident
                      w3_ref, b3_ref,         # (256, 128) bf16 / (1, 128) f32, resident (cols>=14 zero)
                      scale_ref, offset_ref,  # (1, 128) f32: (maxs-mins)/2 and scale+mins
                      out_ref,                # (B_pad, 128) f32
                      acc_ref):               # (B_pad, 512) f32 scratch accumulator
    k = pl.program_id(0)

    @pl.when(k == 0)
    def _():
        acc_ref[...] = jnp.zeros_like(acc_ref)

    # Streamed features_extractor matmul: bf16 operands, f32 accumulation.
    acc_ref[...] += jnp.dot(x_ref[...], wf_ref[...],
                            preferred_element_type=jnp.float32)

    @pl.when(k == pl.num_programs(0) - 1)
    def _():
        # features_extractor bias + ReLU
        f = jnp.maximum(acc_ref[...] + bf_ref[...], 0.0)

        # policy_net MLP (VMEM-resident weights)
        h = jnp.dot(f.astype(jnp.bfloat16), w0_ref[...],
                    preferred_element_type=jnp.float32)
        h = jnp.maximum(h + b0_ref[...], 0.0)

        h = jnp.dot(h.astype(jnp.bfloat16), w1_ref[...],
                    preferred_element_type=jnp.float32)
        h = jnp.maximum(h + b1_ref[...], 0.0)

        h = jnp.dot(h.astype(jnp.bfloat16), w2_ref[...],
                    preferred_element_type=jnp.float32)
        h = jnp.maximum(h + b2_ref[...], 0.0)

        a = jnp.dot(h.astype(jnp.bfloat16), w3_ref[...],
                    preferred_element_type=jnp.float32)
        a = jnp.tanh(a + b3_ref[...])

        # actions = (a + 1)*(maxs-mins)/2 + mins  ==  a*scale + (scale + mins)
        out_ref[...] = a * scale_ref[...] + offset_ref[...]


def _linear_init(key, fan_in, fan_out):
    """PyTorch-style default Linear init: U(-1/sqrt(fan_in), 1/sqrt(fan_in))."""
    kw, kb = jax.random.split(key)
    bound = 1.0 / math.sqrt(float(fan_in))
    w = jax.random.uniform(kw, (fan_in, fan_out), jnp.float32, -bound, bound)
    b = jax.random.uniform(kb, (1, fan_out), jnp.float32, -bound, bound)
    return w, b


def make_bc_policy_params(key, obs_flat_dim):
    """f32 'master' parameters, mirroring the PyTorch module."""
    keys = jax.random.split(key, 5)
    wf, bf = _linear_init(keys[0], obs_flat_dim, FEAT_DIM)   # features_extractor
    w0, b0 = _linear_init(keys[1], 512, 512)
    w1, b1 = _linear_init(keys[2], 512, 512)
    w2, b2 = _linear_init(keys[3], 512, 256)
    w3, b3 = _linear_init(keys[4], 256, ACTION_DIM)
    mins = jnp.array([r[0] for r in JOINT_RANGES], jnp.float32).reshape(1, ACTION_DIM)
    maxs = jnp.array([r[1] for r in JOINT_RANGES], jnp.float32).reshape(1, ACTION_DIM)
    scale = (maxs - mins) / 2.0
    return dict(wf=wf, bf=bf, w0=w0, b0=b0, w1=w1, b1=b1,
                w2=w2, b2=b2, w3=w3, b3=b3, scale=scale, mins=mins)


def prepare_kernel_params(params, tk=None):
    """One-time conversion for the kernel:
       * bf16 weights, f32 biases,
       * wf K dimension zero-padded to a multiple of the K-tile TK,
       * last stage zero-padded to 128 output lanes.
       Returns (kernel_params, tk)."""
    K = params["wf"].shape[0]
    if tk is None:
        tk = _default_tk(K)
    assert tk % K_ALIGN == 0, "K tile must be a multiple of 512"
    K_pad = _round_up(K, tk)

    wf = jnp.pad(params["wf"], ((0, K_pad - K), (0, 0)))      # zero rows: exact no-op
    pad = OUT_PAD - ACTION_DIM
    w3 = jnp.pad(params["w3"], ((0, 0), (0, pad)))
    b3 = jnp.pad(params["b3"], ((0, 0), (0, pad)))
    scale = jnp.pad(params["scale"], ((0, 0), (0, pad)))
    offset = jnp.pad(params["scale"] + params["mins"], ((0, 0), (0, pad)))

    kparams = dict(
        wf=wf.astype(jnp.bfloat16), bf=params["bf"],
        w0=params["w0"].astype(jnp.bfloat16), b0=params["b0"],
        w1=params["w1"].astype(jnp.bfloat16), b1=params["b1"],
        w2=params["w2"].astype(jnp.bfloat16), b2=params["b2"],
        w3=w3.astype(jnp.bfloat16), b3=b3,
        scale=scale, offset=offset,
    )
    return kparams, tk


@partial(jax.jit, static_argnames=("tk",))
def bc_policy_forward(obs_nchw, kparams, *, tk):
    """obs_nchw: (B, C, H, W) float32 -> actions (B, ACTION_DIM) float32."""
    B = obs_nchw.shape[0]
    x = obs_nchw.reshape(B, -1)
    K = x.shape[1]
    K_pad, feat = kparams["wf"].shape
    assert feat == FEAT_DIM and K_pad % tk == 0 and K_pad >= K
    num_k = K_pad // tk

    # Pad batch to bf16 LHS tile granularity and K to the tile grid; cast input
    # to bf16 in the wrapper so the kernel streams half the bytes.
    B_pad = _round_up(max(B, B_PAD_MULT), B_PAD_MULT)
    if (B_pad != B) or (K_pad != K):
        x = jnp.pad(x, ((0, B_pad - B), (0, K_pad - K)))
    x = x.astype(jnp.bfloat16)

    # --- VMEM budget: double-buffered streamed tiles + resident tail set. ---
    resident_names = ("bf", "w0", "b0", "w1", "b1", "w2", "b2",
                      "w3", "b3", "scale", "offset")
    resident_bytes = sum(math.prod(kparams[n].shape) * kparams[n].dtype.itemsize
                         for n in resident_names)
    stream_bytes = 2 * (tk * FEAT_DIM * 2 + B_pad * tk * 2)   # 2 buffers, bf16 tiles
    acc_out_bytes = B_pad * FEAT_DIM * 4 + B_pad * OUT_PAD * 4
    vmem_limit = int(stream_bytes + resident_bytes + acc_out_bytes + (4 << 20))

    flops = 2 * B_pad * (K_pad * FEAT_DIM + 512 * 512 + 512 * 512
                         + 512 * 256 + 256 * OUT_PAD)
    bytes_accessed = (B_pad * K_pad * 2 + K_pad * FEAT_DIM * 2
                      + resident_bytes + B_pad * OUT_PAD * 4)
    cost = pl.CostEstimate(flops=flops,
                           transcendentals=B_pad * OUT_PAD,      # tanh
                           bytes_accessed=bytes_accessed)

    def _resident(shape):
        return pl.BlockSpec(shape, lambda k: (0, 0))

    grid_spec = pltpu.PrefetchScalarGridSpec(
        num_scalar_prefetch=0,
        grid=(num_k,),
        in_specs=[
            pl.BlockSpec((B_pad, tk), lambda k: (0, k)),        # x     : K-streamed
            pl.BlockSpec((tk, FEAT_DIM), lambda k: (k, 0)),     # wf    : K-streamed
            _resident((1, FEAT_DIM)),                           # bf
            _resident((512, 512)), _resident((1, 512)),         # w0, b0
            _resident((512, 512)), _resident((1, 512)),         # w1, b1
            _resident((512, 256)), _resident((1, 256)),         # w2, b2
            _resident((256, OUT_PAD)), _resident((1, OUT_PAD)), # w3, b3
            _resident((1, OUT_PAD)), _resident((1, OUT_PAD)),   # scale, offset
        ],
        out_specs=pl.BlockSpec((B_pad, OUT_PAD), lambda k: (0, 0)),
        scratch_shapes=[pltpu.VMEM((B_pad, FEAT_DIM), jnp.float32)],
    )

    out = pl.pallas_call(
        _bc_policy_kernel,
        out_shape=jax.ShapeDtypeStruct((B_pad, OUT_PAD), jnp.float32),
        grid_spec=grid_spec,
        compiler_params=pltpu.CompilerParams(
            dimension_semantics=("arbitrary",),       # K is a reduction axis
            vmem_limit_bytes=vmem_limit),
        cost_estimate=cost,
    )(x,
      kparams["wf"], kparams["bf"],
      kparams["w0"], kparams["b0"],
      kparams["w1"], kparams["b1"],
      kparams["w2"], kparams["b2"],
      kparams["w3"], kparams["b3"],
      kparams["scale"], kparams["offset"])

    return out[:B, :ACTION_DIM]


def _reference_forward_f32(obs_nchw, params):
    """Pure-JAX f32 reference mirroring the PyTorch forward."""
    x = obs_nchw.reshape(obs_nchw.shape[0], -1)
    f = jnp.maximum(x @ params["wf"] + params["bf"], 0.0)
    h = jnp.maximum(f @ params["w0"] + params["b0"], 0.0)
    h = jnp.maximum(h @ params["w1"] + params["b1"], 0.0)
    h = jnp.maximum(h @ params["w2"] + params["b2"], 0.0)
    a = jnp.tanh(h @ params["w3"] + params["b3"])
    return (a + 1.0) * params["scale"] + params["mins"]


def _reference_forward_bf16(obs_nchw, params):
    """Pure-JAX reference at the kernel's precision (bf16 operands, f32 accum)."""
    def dot(a, w):
        return jnp.dot(a.astype(jnp.bfloat16), w.astype(jnp.bfloat16),
                       preferred_element_type=jnp.float32)
    x = obs_nchw.reshape(obs_nchw.shape[0], -1)
    f = jnp.maximum(dot(x, params["wf"]) + params["bf"], 0.0)
    h = jnp.maximum(dot(f, params["w0"]) + params["b0"], 0.0)
    h = jnp.maximum(dot(h, params["w1"]) + params["b1"], 0.0)
    h = jnp.maximum(dot(h, params["w2"]) + params["b2"], 0.0)
    a = jnp.tanh(dot(h, params["w3"]) + params["b3"])
    return (a + 1.0) * params["scale"] + params["mins"]


if __name__ == "__main__":
    key = jax.random.PRNGKey(0)
    k_obs, k_params = jax.random.split(key)

    # Small synthetic observation: batch=2, channels=4, spatial=16x16 (NCHW).
    B, C, H, W = 2, 4, 16, 16
    obs = jax.random.uniform(k_obs, (B, C, H, W), jnp.float32)

    params = make_bc_policy_params(k_params, obs_flat_dim=C * H * W)
    # Force TK=512 so the K-tiled reduction grid (2 steps for K=1024) is
    # exercised; production would use the generation-aware default (8K/16K).
    kparams, tk = prepare_kernel_params(params, tk=512)

    actions = bc_policy_forward(obs, kparams, tk=tk)
    actions = jax.block_until_ready(actions)
    assert actions.shape == (B, ACTION_DIM)

    # Tight check against a reference at matching (bf16-operand) precision.
    ref_bf16 = _reference_forward_bf16(obs, params)
    assert jnp.allclose(actions, ref_bf16, atol=2e-3, rtol=2e-3), \
        "mismatch vs bf16-precision reference"

    # Loose sanity check against the full-f32 PyTorch-equivalent reference.
    ref_f32 = _reference_forward_f32(obs, params)
    assert jnp.allclose(actions, ref_f32, atol=5e-2, rtol=5e-2), \
        "mismatch vs f32 reference"

    print("KERNEL_OK")
</pallas_src>

<mosaic_0001>
module attributes {stable_mosaic.version = 11 : i64} {
  func.func @_bc_policy_kernel(%arg0: i32, %arg1: memref<16x512xbf16, #tpu.memory_space<vmem>>, %arg2: memref<512x512xbf16, #tpu.memory_space<vmem>>, %arg3: memref<1x512xf32, #tpu.memory_space<vmem>>, %arg4: memref<512x512xbf16, #tpu.memory_space<vmem>>, %arg5: memref<1x512xf32, #tpu.memory_space<vmem>>, %arg6: memref<512x512xbf16, #tpu.memory_space<vmem>>, %arg7: memref<1x512xf32, #tpu.memory_space<vmem>>, %arg8: memref<512x256xbf16, #tpu.memory_space<vmem>>, %arg9: memref<1x256xf32, #tpu.memory_space<vmem>>, %arg10: memref<256x128xbf16, #tpu.memory_space<vmem>>, %arg11: memref<1x128xf32, #tpu.memory_space<vmem>>, %arg12: memref<1x128xf32, #tpu.memory_space<vmem>>, %arg13: memref<1x128xf32, #tpu.memory_space<vmem>>, %arg14: memref<16x128xf32, #tpu.memory_space<vmem>>, %arg15: memref<16x512xf32, #tpu.memory_space<vmem>>) attributes {dimension_semantics = [#tpu.dimension_semantics<arbitrary>], iteration_bounds = array<i64: 2>, scalar_prefetch = 0 : i64, scratch_operands = 1 : i64, tpu.core_type = #tpu.core_type<tc>, window_params = [{transform_indices = @transform_0, window_bounds = array<i64: 16, 512>}, {transform_indices = @transform_1, window_bounds = array<i64: 512, 512>}, {pipeline_mode = #tpu.pipeline_mode<synchronous>, transform_indices = @transform_2, window_bounds = array<i64: 1, 512>}, {pipeline_mode = #tpu.pipeline_mode<synchronous>, transform_indices = @transform_3, window_bounds = array<i64: 512, 512>}, {pipeline_mode = #tpu.pipeline_mode<synchronous>, transform_indices = @transform_4, window_bounds = array<i64: 1, 512>}, {pipeline_mode = #tpu.pipeline_mode<synchronous>, transform_indices = @transform_5, window_bounds = array<i64: 512, 512>}, {pipeline_mode = #tpu.pipeline_mode<synchronous>, transform_indices = @transform_6, window_bounds = array<i64: 1, 512>}, {pipeline_mode = #tpu.pipeline_mode<synchronous>, transform_indices = @transform_7, window_bounds = array<i64: 512, 256>}, {pipeline_mode = #tpu.pipeline_mode<synchronous>, transform_indices = @transform_8, window_bounds = array<i64: 1, 256>}, {pipeline_mode = #tpu.pipeline_mode<synchronous>, transform_indices = @transform_9, window_bounds = array<i64: 256, 128>}, {pipeline_mode = #tpu.pipeline_mode<synchronous>, transform_indices = @transform_10, window_bounds = array<i64: 1, 128>}, {pipeline_mode = #tpu.pipeline_mode<synchronous>, transform_indices = @transform_11, window_bounds = array<i64: 1, 128>}, {pipeline_mode = #tpu.pipeline_mode<synchronous>, transform_indices = @transform_12, window_bounds = array<i64: 1, 128>}, {pipeline_mode = #tpu.pipeline_mode<synchronous>, transform_indices = @transform_13, window_bounds = array<i64: 16, 128>}]} {
    %c0_i32 = arith.constant 0 : i32
    %0 = arith.cmpi eq, %arg0, %c0_i32 : i32
    %1 = arith.extui %0 : i1 to i32
    %c0_i32_0 = arith.constant 0 : i32
    %2 = arith.cmpi ne, %1, %c0_i32_0 : i32
    scf.if %2 {
      %cst_9 = arith.constant 0.000000e+00 : f32
      %12 = vector.broadcast %cst_9 : f32 to vector<16x512xf32>
      %c0_10 = arith.constant 0 : index
      %c0_11 = arith.constant 0 : index
      %13 = vector.load %arg15[%c0_10, %c0_11] : memref<16x512xf32, #tpu.memory_space<vmem>>, vector<16x512xf32>
      tpu.vector_store %arg15[%c0_10, %c0_11], %12 {strides = array<i32>} : memref<16x512xf32, #tpu.memory_space<vmem>>, vector<16x512xf32>,
    } else {
    }
    %c0 = arith.constant 0 : index
    %c0_1 = arith.constant 0 : index
    %3 = vector.load %arg15[%c0, %c0_1] : memref<16x512xf32, #tpu.memory_space<vmem>>, vector<16x512xf32>
    %c0_2 = arith.constant 0 : index
    %c0_3 = arith.constant 0 : index
    %4 = vector.load %arg1[%c0_2, %c0_3] : memref<16x512xbf16, #tpu.memory_space<vmem>>, vector<16x512xbf16>
    %c0_4 = arith.constant 0 : index
    %c0_5 = arith.constant 0 : index
    %5 = vector.load %arg2[%c0_4, %c0_5] : memref<512x512xbf16, #tpu.memory_space<vmem>>, vector<512x512xbf16>
    %cst = arith.constant dense<0.000000e+00> : vector<16x512xf32>
    %6 = tpu.matmul %4, %5, %cst {dimension_numbers = #tpu.dot_dimension_numbers<[1], [0], [0], [1], [0, 0, 1, 1], [], []>} : vector<16x512xbf16>, vector<512x512xbf16>, vector<16x512xf32> -> vector<16x512xf32>
    %7 = arith.addf %3, %6 : vector<16x512xf32>
    %c0_6 = arith.constant 0 : index
    %c0_7 = arith.constant 0 : index
    %8 = vector.load %arg15[%c0_6, %c0_7] : memref<16x512xf32, #tpu.memory_space<vmem>>, vector<16x512xf32>
    tpu.vector_store %arg15[%c0_6, %c0_7], %7 {strides = array<i32>} : memref<16x512xf32, #tpu.memory_space<vmem>>, vector<16x512xf32>,
    %c1_i32 = arith.constant 1 : i32
    %9 = arith.cmpi eq, %arg0, %c1_i32 : i32
    %10 = arith.extui %9 : i1 to i32
    %c0_i32_8 = arith.constant 0 : i32
    %11 = arith.cmpi ne, %10, %c0_i32_8 : i32
    scf.if %11 {
      %c0_9 = arith.constant 0 : index
      %c0_10 = arith.constant 0 : index
      %12 = vector.load %arg15[%c0_9, %c0_10] : memref<16x512xf32, #tpu.memory_space<vmem>>, vector<16x512xf32>
      %c0_11 = arith.constant 0 : index
      %c0_12 = arith.constant 0 : index
      %13 = vector.load %arg3[%c0_11, %c0_12] : memref<1x512xf32, #tpu.memory_space<vmem>>, vector<1x512xf32>
      %14 = vector.broadcast %13 : vector<1x512xf32> to vector<16x512xf32>
      %15 = arith.addf %12, %14 : vector<16x512xf32>
      %cst_13 = arith.constant 0.000000e+00 : f32
      %16 = vector.broadcast %cst_13 : f32 to vector<16x512xf32>
      %17 = arith.maximumf %15, %16 : vector<16x512xf32>
      %18 = arith.truncf %17 : vector<16x512xf32> to vector<16x512xbf16>
      %c0_14 = arith.constant 0 : index
      %c0_15 = arith.constant 0 : index
      %19 = vector.load %arg4[%c0_14, %c0_15] : memref<512x512xbf16, #tpu.memory_space<vmem>>, vector<512x512xbf16>
      %cst_16 = arith.constant dense<0.000000e+00> : vector<16x512xf32>
      %20 = tpu.matmul %18, %19, %cst_16 {dimension_numbers = #tpu.dot_dimension_numbers<[1], [0], [0], [1], [0, 0, 1, 1], [], []>} : vector<16x512xbf16>, vector<512x512xbf16>, vector<16x512xf32> -> vector<16x512xf32>
      %c0_17 = arith.constant 0 : index
      %c0_18 = arith.constant 0 : index
      %21 = vector.load %arg5[%c0_17, %c0_18] : memref<1x512xf32, #tpu.memory_space<vmem>>, vector<1x512xf32>
      %22 = vector.broadcast %21 : vector<1x512xf32> to vector<16x512xf32>
      %23 = arith.addf %20, %22 : vector<16x512xf32>
      %cst_19 = arith.constant 0.000000e+00 : f32
      %24 = vector.broadcast %cst_19 : f32 to vector<16x512xf32>
      %25 = arith.maximumf %23, %24 : vector<16x512xf32>
      %26 = arith.truncf %25 : vector<16x512xf32> to vector<16x512xbf16>
      %c0_20 = arith.constant 0 : index
      %c0_21 = arith.constant 0 : index
      %27 = vector.load %arg6[%c0_20, %c0_21] : memref<512x512xbf16, #tpu.memory_space<vmem>>, vector<512x512xbf16>
      %cst_22 = arith.constant dense<0.000000e+00> : vector<16x512xf32>
      %28 = tpu.matmul %26, %27, %cst_22 {dimension_numbers = #tpu.dot_dimension_numbers<[1], [0], [0], [1], [0, 0, 1, 1], [], []>} : vector<16x512xbf16>, vector<512x512xbf16>, vector<16x512xf32> -> vector<16x512xf32>
      %c0_23 = arith.constant 0 : index
      %c0_24 = arith.constant 0 : index
      %29 = vector.load %arg7[%c0_23, %c0_24] : memref<1x512xf32, #tpu.memory_space<vmem>>, vector<1x512xf32>
      %30 = vector.broadcast %29 : vector<1x512xf32> to vector<16x512xf32>
      %31 = arith.addf %28, %30 : vector<16x512xf32>
      %cst_25 = arith.constant 0.000000e+00 : f32
      %32 = vector.broadcast %cst_25 : f32 to vector<16x512xf32>
      %33 = arith.maximumf %31, %32 : vector<16x512xf32>
      %34 = arith.truncf %33 : vector<16x512xf32> to vector<16x512xbf16>
      %c0_26 = arith.constant 0 : index
      %c0_27 = arith.constant 0 : index
      %35 = vector.load %arg8[%c0_26, %c0_27] : memref<512x256xbf16, #tpu.memory_space<vmem>>, vector<512x256xbf16>
      %cst_28 = arith.constant dense<0.000000e+00> : vector<16x256xf32>
      %36 = tpu.matmul %34, %35, %cst_28 {dimension_numbers = #tpu.dot_dimension_numbers<[1], [0], [0], [1], [0, 0, 1, 1], [], []>} : vector<16x512xbf16>, vector<512x256xbf16>, vector<16x256xf32> -> vector<16x256xf32>
      %c0_29 = arith.constant 0 : index
      %c0_30 = arith.constant 0 : index
      %37 = vector.load %arg9[%c0_29, %c0_30] : memref<1x256xf32, #tpu.memory_space<vmem>>, vector<1x256xf32>
      %38 = vector.broadcast %37 : vector<1x256xf32> to vector<16x256xf32>
      %39 = arith.addf %36, %38 : vector<16x256xf32>
      %cst_31 = arith.constant 0.000000e+00 : f32
      %40 = vector.broadcast %cst_31 : f32 to vector<16x256xf32>
      %41 = arith.maximumf %39, %40 : vector<16x256xf32>
      %42 = arith.truncf %41 : vector<16x256xf32> to vector<16x256xbf16>
      %c0_32 = arith.constant 0 : index
      %c0_33 = arith.constant 0 : index
      %43 = vector.load %arg10[%c0_32, %c0_33] : memref<256x128xbf16, #tpu.memory_space<vmem>>, vector<256x128xbf16>
      %cst_34 = arith.constant dense<0.000000e+00> : vector<16x128xf32>
      %44 = tpu.matmul %42, %43, %cst_34 {dimension_numbers = #tpu.dot_dimension_numbers<[1], [0], [0], [1], [0, 0, 1, 1], [], []>} : vector<16x256xbf16>, vector<256x128xbf16>, vector<16x128xf32> -> vector<16x128xf32>
      %c0_35 = arith.constant 0 : index
      %c0_36 = arith.constant 0 : index
      %45 = vector.load %arg11[%c0_35, %c0_36] : memref<1x128xf32, #tpu.memory_space<vmem>>, vector<1x128xf32>
      %46 = vector.broadcast %45 : vector<1x128xf32> to vector<16x128xf32>
      %47 = arith.addf %44, %46 : vector<16x128xf32>
      %48 = math.tanh %47 : vector<16x128xf32>
      %c0_37 = arith.constant 0 : index
      %c0_38 = arith.constant 0 : index
      %49 = vector.load %arg12[%c0_37, %c0_38] : memref<1x128xf32, #tpu.memory_space<vmem>>, vector<1x128xf32>
      %50 = vector.broadcast %49 : vector<1x128xf32> to vector<16x128xf32>
      %51 = arith.mulf %48, %50 : vector<16x128xf32>
      %c0_39 = arith.constant 0 : index
      %c0_40 = arith.constant 0 : index
      %52 = vector.load %arg13[%c0_39, %c0_40] : memref<1x128xf32, #tpu.memory_space<vmem>>, vector<1x128xf32>
      %53 = vector.broadcast %52 : vector<1x128xf32> to vector<16x128xf32>
      %54 = arith.addf %51, %53 : vector<16x128xf32>
      %c0_41 = arith.constant 0 : index
      %c0_42 = arith.constant 0 : index
      %55 = vector.load %arg14[%c0_41, %c0_42] : memref<16x128xf32, #tpu.memory_space<vmem>>, vector<16x128xf32>
      tpu.vector_store %arg14[%c0_41, %c0_42], %54 {strides = array<i32>} : memref<16x128xf32, #tpu.memory_space<vmem>>, vector<16x128xf32>,
    } else {
    }
    return
  }
  func.func @transform_0(%arg0: i32) -> (i32, i32) {
    %c0_i32 = arith.constant 0 : i32
    %c0_i32_0 = arith.constant 0 : i32
    return %c0_i32, %arg0 : i32, i32
  }
  func.func @transform_1(%arg0: i32) -> (i32, i32) {
    %c0_i32 = arith.constant 0 : i32
    %c0_i32_0 = arith.constant 0 : i32
    return %arg0, %c0_i32 : i32, i32
  }
  func.func @transform_2(%arg0: i32) -> (i32, i32) {
    %c0_i32 = arith.constant 0 : i32
    %c0_i32_0 = arith.constant 0 : i32
    %c0_i32_1 = arith.constant 0 : i32
    return %c0_i32, %c0_i32_0 : i32, i32
  }
  func.func @transform_3(%arg0: i32) -> (i32, i32) {
    %c0_i32 = arith.constant 0 : i32
    %c0_i32_0 = arith.constant 0 : i32
    %c0_i32_1 = arith.constant 0 : i32
    return %c0_i32, %c0_i32_0 : i32, i32
  }
  func.func @transform_4(%arg0: i32) -> (i32, i32) {
    %c0_i32 = arith.constant 0 : i32
    %c0_i32_0 = arith.constant 0 : i32
    %c0_i32_1 = arith.constant 0 : i32
    return %c0_i32, %c0_i32_0 : i32, i32
  }
  func.func @transform_5(%arg0: i32) -> (i32, i32) {
    %c0_i32 = arith.constant 0 : i32
    %c0_i32_0 = arith.constant 0 : i32
    %c0_i32_1 = arith.constant 0 : i32
    return %c0_i32, %c0_i32_0 : i32, i32
  }
  func.func @transform_6(%arg0: i32) -> (i32, i32) {
    %c0_i32 = arith.constant 0 : i32
    %c0_i32_0 = arith.constant 0 : i32
    %c0_i32_1 = arith.constant 0 : i32
    return %c0_i32, %c0_i32_0 : i32, i32
  }
  func.func @transform_7(%arg0: i32) -> (i32, i32) {
    %c0_i32 = arith.constant 0 : i32
    %c0_i32_0 = arith.constant 0 : i32
    %c0_i32_1 = arith.constant 0 : i32
    return %c0_i32, %c0_i32_0 : i32, i32
  }
  func.func @transform_8(%arg0: i32) -> (i32, i32) {
    %c0_i32 = arith.constant 0 : i32
    %c0_i32_0 = arith.constant 0 : i32
    %c0_i32_1 = arith.constant 0 : i32
    return %c0_i32, %c0_i32_0 : i32, i32
  }
  func.func @transform_9(%arg0: i32) -> (i32, i32) {
    %c0_i32 = arith.constant 0 : i32
    %c0_i32_0 = arith.constant 0 : i32
    %c0_i32_1 = arith.constant 0 : i32
    return %c0_i32, %c0_i32_0 : i32, i32
  }
  func.func @transform_10(%arg0: i32) -> (i32, i32) {
    %c0_i32 = arith.constant 0 : i32
    %c0_i32_0 = arith.constant 0 : i32
    %c0_i32_1 = arith.constant 0 : i32
    return %c0_i32, %c0_i32_0 : i32, i32
  }
  func.func @transform_11(%arg0: i32) -> (i32, i32) {
    %c0_i32 = arith.constant 0 : i32
    %c0_i32_0 = arith.constant 0 : i32
    %c0_i32_1 = arith.constant 0 : i32
    return %c0_i32, %c0_i32_0 : i32, i32
  }
  func.func @transform_12(%arg0: i32) -> (i32, i32) {
    %c0_i32 = arith.constant 0 : i32
    %c0_i32_0 = arith.constant 0 : i32
    %c0_i32_1 = arith.constant 0 : i32
    return %c0_i32, %c0_i32_0 : i32, i32
  }
  func.func @transform_13(%arg0: i32) -> (i32, i32) {
    %c0_i32 = arith.constant 0 : i32
    %c0_i32_0 = arith.constant 0 : i32
    %c0_i32_1 = arith.constant 0 : i32
    return %c0_i32, %c0_i32_0 : i32, i32
  }
}

</mosaic_0001>

<bundles_post_ra>
// kernel: bc_policy_forward.1
= control target key start
LH: loop header
LB: loop body
LE: loop exit
PB: predicated region body
PF: predicated region fallthrough
CT: control target
= control target key end

     0   :  { %s6252_s0 = inlined_call_operand.vmem [shape: bf16[16,1024], index: 0, kind: input, shape index: {}]   ;;  %s6253_s1 = inlined_call_operand.hbm [shape: bf16[1024,512], index: 1, kind: input, shape index: {}]   ;;  %s6254_s2 = inlined_call_operand.vmem [shape: f32[1,512], index: 2, kind: input, shape index: {}]   ;;  %s6255_s3 = inlined_call_operand.hbm [shape: bf16[512,512], index: 3, kind: input, shape index: {}]   ;;  %s6256_s4 = inlined_call_operand.vmem [shape: f32[1,512], index: 4, kind: input, shape index: {}]   ;;  %s6257_s5 = inlined_call_operand.hbm [shape: bf16[512,512], index: 5, kind: input, shape index: {}]   ;;  %s6258_s6 = inlined_call_operand.vmem [shape: f32[1,512], index: 6, kind: input, shape index: {}]   ;;  %s6259_s7 = inlined_call_operand.hbm [shape: bf16[512,256], index: 7, kind: input, shape index: {}]   ;;  %s6260_s8 = inlined_call_operand.vmem [shape: f32[1,256], index: 8, kind: input, shape index: {}]   ;;  %s6261_s9 = inlined_call_operand.vmem [shape: bf16[256,128], index: 9, kind: input, shape index: {}]   ;;  %s6262_s10 = inlined_call_operand.vmem [shape: f32[1,128], index: 10, kind: input, shape index: {}]   ;;  %s6263_s11 = inlined_call_operand.vmem [shape: f32[1,128], index: 11, kind: input, shape index: {}]   ;;  %s6264_s12 = inlined_call_operand.vmem [shape: f32[1,128], index: 12, kind: input, shape index: {}]   ;;  %s6265_s13 = inlined_call_operand.vmem [shape: f32[16,128], index: 13, kind: output, shape index: {}]  }
   0x1   :  { %6272 = sst [smem:[#allocation16_spill]] %s6255_s3 }
   0x2   :  { %6273 = sst [smem:[#allocation17_spill]] %s6265_s13 }
   0x3   :  { %18 = vsyncpa [#allocation5], 0 }
   0x4   :  { %20 = vsyncpa [#allocation5 + $0x1], 0 }
   0x5   :  { %21 = vsyncpa [#allocation7], 0 }
   0x6   :  { %22 = vsyncpa [#allocation10], 0  ;;  %s5832_s25 = smov 0   ;;  %s5834_s26 = smov 0  }
   0x7   :  { %s5836_s27 = smov 0   ;;  %s5838_s28 = smov 0  }
   0x8 LB: > { %s5851_s29 = sadd.s32 4294967295, %s5749_s28   ;;  %s5854_s30 = sadd.s32 1, %s5749_s28   ;;  %s5749_s28 = sphi %s5838_s28, %s6290_s28   ;;  %s5745_s27 = sphi %s5836_s27, %s6294_s27   ;;  %s5741_s26 = sphi %s5834_s26, %s6293_s26   ;;  %s5737_s25 = sphi %s5832_s25, %s6292_s25  }
   0x9   : > { %6274 = sst [smem:[#allocation14_spill]] %s5854_s30  ;;  %s32_s14 = ssub.s32 %s5749_s28, %s5854_s30 }
   0xa   : > { %s35_s15 = sadd.s32 1, %s5745_s27  ;;  %p33_p0 = scmp.eq.s32.totalorder %s32_s14, 0 }
   0xb   : > { %p42_p1 = scmp.ne.s32.totalorder %s5745_s27, %s5741_s26  ;;  %p43_p2 = scmp.eq.s32.totalorder %s5749_s28, 0 }
   0xc   : > { %p74_p3 = scmp.ne.s32.totalorder %s5741_s26, %s5737_s25  ;;  %p6268_p5 = scmp.eq.s32.totalorder %s5851_s29, 0 }
   0xd   : > { %s5864_s16 = scalar_select %p33_p0, %s5745_s27, %s35_s15  }
   0xe   : > { %p5866_p4 = por %p43_p2, %p42_p1  ;;  %p4315_p6 = scmp.ge.s32.totalorder %s5749_s28, 1 }
   0xf   : > { %6275 = sst [smem:[#allocation15_spill]] %s5864_s16  ;;  %p337_p7 = scmp.lt.s32.totalorder %s5749_s28, 3 }
  0x10   : > { %p5875_p8 = por %p6268_p5, %p74_p3  ;;  %s5751_s20 = smov [#allocation6]  }
  0x11   : > { %p5880_p10 = pnand %p4315_p6, %p337_p7  ;;  %s352_s21 = sshll.u32 %s5751_s20, 4  ;;  %s353_s21 = int_to_ptr.vmem [resolvable:$true] %s352_s21 }
  0x12   : > { %s6277_s18 = scalar_select %p5875_p8, 1, 0 }
  0x13   : > { %s6278_s19 = scalar_select %p5880_p10, 1, 0 }
  0x14   : > { %p4847_p11 = pneg %p5880_p10  ;;  %s5752_s23 = smov [#allocation8]  }
  0x15   : > { %s368_s24 = sshll.u32 %s5752_s23, 4  ;;  %s5753_s25 = smov [#allocation9]   ;;  %s369_s24 = int_to_ptr.vmem [resolvable:$true] %s368_s24 }
  0x16   : > { %p5888_p12 = pnand %p4847_p11, %p6268_p5  ;;  %s384_s14 = sshll.u32 %s5753_s25, 4  ;;  %s385_s14 = int_to_ptr.vmem [resolvable:$true] %s384_s14 }
  0x17   : > { %s5614_s15 = scalar_lea.vmem %s353_s21, 16384  ;;  %p5622_p3 = scmp.lt.s32.totalorder %s353_s21, %s353_s21 }
  0x18   : > { %p5605_p13 = pneg %p5888_p12  ;;  %p5615_p0 = scmp.ne.s32.totalorder %s353_s21, %s5614_s15 }
  0x19   : > { %p5623_p6 = scmp.lt.s32.totalorder %s5614_s15, %s5614_s15 }
  0x1a   : > { %p5617_p1 = pnand %p5615_p0, %p5605_p13 }
  0x1b   : > { %p5624_p7 = por %p5623_p6, %p5622_p3 }
  0x1c   : > { %p5618_p2 = pneg %p5617_p1 }
  0x1e   : > { %p5625_p11 = pnand %p5624_p7, %p5618_p2 }
  0x20   : > { %5628 = shalt.err (!%p5625_p11)
}
  0x21   : > { %s5754_s20 = smov 256   ;;  %s5755_s23 = smov 16  }
  0x22   : > { %s6280_s3 = sld [smem:[#allocation16_spill]]  ;;  %s5640_s30 = scalar_lea.vmem %s369_s24, 16384 }
  0x23   : > { %p5641_p9 = scmp.ne.s32.totalorder %s369_s24, %s5640_s30  ;;  %p5648_p5 = scmp.lt.s32.totalorder %s369_s24, %s369_s24 }
  0x24   : > { %p5649_p8 = scmp.lt.s32.totalorder %s5640_s30, %s5640_s30 }
  0x25   : > { %p5643_p0 = pnand %p5641_p9, %p5605_p13 }
  0x26   : > { %p5650_p3 = por %p5649_p8, %p5648_p5 }
  0x27   : > { %p5644_p1 = pneg %p5643_p0 }
  0x28   : > { %4850 = dma.hbm_to_vmem [thread:$0]  (!%p5888_p12), %s6280_s3, 16384, %s353_s21, [#allocation7], %s5754_s20, %s5754_s20, %s5755_s23  }
  0x29   : > { %p5651_p2 = pnand %p5650_p3, %p5644_p1 }
  0x2b   : > { %5654 = shalt.err (!%p5651_p2)
}
  0x2c   : > { %4853 = dma.hbm_to_vmem [thread:$0]  (!%p5888_p12), %s6257_s5, 16384, %s369_s24, [#allocation7], %s5754_s20, %s5754_s20, %s5755_s23  }
  0x2d   : > { %s5666_s16 = scalar_lea.vmem %s385_s14, 8192  ;;  %p5674_p11 = scmp.lt.s32.totalorder %s385_s14, %s385_s14 }
  0x2e   : > { %p5667_p6 = scmp.ne.s32.totalorder %s385_s14, %s5666_s16  ;;  %p5675_p0 = scmp.lt.s32.totalorder %s5666_s16, %s5666_s16 }
  0x30   : > { %p5669_p7 = pnand %p5667_p6, %p5605_p13  ;;  %p5676_p10 = por %p5675_p0, %p5674_p11 }
  0x32   : > { %p5670_p9 = pneg %p5669_p7 }
  0x34   : > { %p5677_p5 = pnand %p5676_p10, %p5670_p9 }
  0x36   : > { %5680 = shalt.err (!%p5677_p5)
}
  0x37   : > { %s5756_s30 = smov 128   ;;  %s5757_s21 = smov 8  }
  0x38   : > { %4856 = dma.hbm_to_vmem [thread:$0]  (!%p5888_p12), %s6259_s7, 8192, %s385_s14, [#allocation10], %s5756_s30, %s5756_s30, %s5757_s21  }
  0x39   : > { %p4319_p8 = scmp.ge.s32.totalorder %s5749_s28, 2 }
  0x3b   : > { %409 = sbr.rel (%p4319_p8) target bundleno = 95 (0x5f), region = 60 }
  0x40   : > { %412 = sbr.rel (!%p5866_p4) target bundleno = 70 (0x46), region = 64  ;;  %s414_s24 = sand.u32 (%p5866_p4), 1, %s5745_s27  }
  0x41   : > { %s4808_s20 = sshll.u32 (%p5866_p4), %s5749_s28, 4  ;;  %s4320_s23 = sshll.u32 (%p5866_p4), %s414_s24, 5 }
  0x42   : > { %s419_s3 = scalar_lea.vmem (%p5866_p4), %s6252_s0, %s4808_s20  ;;  %s416_s22 = scalar_lea.vmem (%p5866_p4), [#allocation3], %s4320_s23 }
  0x43   : > { %v432_v0 = vld [vmem:[%s419_s3] sm:$0xff] (%p5866_p4)  ;;  %v434_v1 = vld [vmem:[%s419_s3 + $0x8] sm:$0xff] (%p5866_p4) }
  0x44   : > { %v436_v2 = vld [vmem:[%s419_s3 + $0x20] sm:$0xff] (%p5866_p4)  ;;  %433 = vst [vmem:[%s416_s22] sm:$0xff] (%p5866_p4), %v432_v0  ;;  %435 = vst [vmem:[%s416_s22 + $0x8] sm:$0xff] (%p5866_p4), %v434_v1  ;;  %v438_v3 = vld [vmem:[%s419_s3 + $0x28] sm:$0xff] (%p5866_p4) }
  0x45   : > { %437 = vst [vmem:[%s416_s22 + $0x10] sm:$0xff] %v436_v2  ;;  %439 = vst [vmem:[%s416_s22 + $0x18] sm:$0xff] %v438_v3 }
  0x46 PF: > { %s446_s14 = sand.u32 1, %s5745_s27   ;;  %s4810_s30 = sshll.u32 %s5749_s28, 14 }
  0x47   : > { %s4323_s21 = sshll.u32 %s446_s14, 10  ;;  %s5931_s24 = scalar_lea.hbm %s6253_s1, %s4810_s30 }
  0x48   : > { %s450_s20 = scalar_lea.vmem [#allocation4], %s4323_s21  ;;  %s5935_s3 = scalar_lea.sflag [#allocation5], %s446_s14 }
  0x49   : > { %s458_s23 = sshll.u32 %s450_s20, 4  ;;  %s5681_s15 = scalar_lea.hbm %s5931_s24, 16384  ;;  %s5933_s23 = int_to_ptr.vmem [resolvable:$true] %s458_s23 }
  0x4a   : > { %p5682_p10 = scmp.ne.s32.totalorder %s5931_s24, %s5681_s15  ;;  %s5685_s22 = scalar_lea.hbm %s6253_s1, 32768 }
  0x4b   : > { %p5686_p1 = scmp.lt.s32.totalorder %s5931_s24, %s6253_s1  ;;  %p5687_p3 = scmp.lt.s32.totalorder %s5685_s22, %s5681_s15 }
  0x4c   : > { %p5683_p12 = pnand %p5682_p10, %p5866_p4 }
  0x4d   : > { %p5688_p2 = por %p5687_p3, %p5686_p1 }
  0x4e   : > { %p5684_p13 = pneg %p5683_p12 }
  0x50   : > { %p5689_p6 = pnand %p5688_p2, %p5684_p13 }
  0x52   : > { %5692 = shalt.err (!%p5689_p6)
}
  0x53   : > { %s5693_s14 = scalar_lea.vmem %s5933_s23, 16384  ;;  %s5758_s21 = smov [#allocation4]  }
  0x54   : > { %p5694_p7 = scmp.ne.s32.totalorder %s5933_s23, %s5693_s14  ;;  %s5697_s13 = sshll.u32 %s5758_s21, 4  ;;  %s5698_s13 = int_to_ptr.vmem [resolvable:$false] %s5697_s13 }
  0x55   : > { %s5699_s20 = scalar_lea.vmem %s5698_s13, 32768  ;;  %p5700_p0 = scmp.lt.s32.totalorder %s5933_s23, %s5698_s13 }
  0x56   : > { %p5695_p9 = pnand %p5694_p7, %p5866_p4  ;;  %p5701_p5 = scmp.lt.s32.totalorder %s5699_s20, %s5693_s14 }
  0x58   : > { %p5696_p11 = pneg %p5695_p9  ;;  %p5702_p8 = por %p5701_p5, %p5700_p0 }
  0x5a   : > { %p5703_p10 = pnand %p5702_p8, %p5696_p11 }
  0x5c   : > { %5706 = shalt.err (!%p5703_p10)
}
  0x5d   : > { %s5759_s15 = smov 256   ;;  %s5760_s28 = smov 16  }
  0x5e   : > { %4839 = dma.hbm_to_vmem [thread:$0]  (%p5866_p4), %s5931_s24, 16384, %s5933_s23, %s5935_s3, %s5759_s15, %s5759_s15, %s5760_s28  }
  0x5f PF: > { %p6281_p12 = scmp.ne.s32.totalorder %s6278_s19, 0 }
  0x60   : > { %s473_s16 = sand.u32 (!%p6281_p12), 1, %s5741_s26   ;;  %p6282_p13 = scmp.ne.s32.totalorder (!%p6281_p12), %s6277_s18, 0 }
  0x61   : > { %470 = sbr.rel (%p6281_p12) target bundleno = 1491 (0x5d3), region = 91  ;;  %s4328_s22 = sshll.u32 (!%p6281_p12), %s473_s16, 5 }
  0x62   : > { %s4329_s30 = sshll.u32 (!%p6281_p12), %s473_s16, 10  ;;  %s5961_s25 = scalar_lea.vmem (!%p6281_p12), [#allocation3], %s4328_s22 }
  0x63   : > { %s480_s14 = scalar_lea.sflag (!%p6281_p12), [#allocation5], %s473_s16  ;;  %s5963_s21 = scalar_lea.vmem (!%p6281_p12), [#allocation4], %s4329_s30 }
  0x66   : > { %5724 = dma.done.wait (%p6282_p13), %s480_s14, 16384  }
  0x67   : > { %5726 = vsyncadd (%p6282_p13), %s480_s14, 4294950912  ;;  %p6283_p4 = scmp.eq.s32.totalorder %s5851_s29, 0 }
  0x69   : > { %5728 = dma.done.wait (%p6283_p4), [#allocation7], 32768   ;;  %p6284_p1 = pmov %p6283_p4 }
  0x6b   : > { %5730 = vsyncadd (%p6284_p1), [#allocation7], 4294934528  ;;  %p6285_p3 = pmov %p6284_p1 }
  0x6c   : > { %p6286_p2 = pmov %p6284_p1 }
  0x6d   : > { %5732 = dma.done.wait (%p6285_p3), [#allocation10], 8192  }
  0x6e   : > { %5734 = vsyncadd (%p6286_p2), [#allocation10], 4294959104  ;;  %p6287_p6 = scmp.ne.s32.totalorder %s5851_s29, 0 }
  0x70   : > { %543 = sbr.rel (%p6287_p6) target bundleno = 122 (0x7a), region = 115 }
  0x75   : > { %v5761_v4 = vmov 0.0  }
  0x76   : > { %544 = vst [vmem:[#allocation2 + $0x30] sm:$0xff] %v5761_v4  ;;  %545 = vst [vmem:[#allocation2] sm:$0xff] %v5761_v4 }
  0x77   : > { %546 = vst [vmem:[#allocation2 + $0x18] sm:$0xff] %v5761_v4  ;;  %547 = vst [vmem:[#allocation2 + $0x10] sm:$0xff] %v5761_v4 }
  0x78   : > { %548 = vst [vmem:[#allocation2 + $0x8] sm:$0xff] %v5761_v4  ;;  %549 = vst [vmem:[#allocation2 + $0x20] sm:$0xff] %v5761_v4 }
  0x79   : > { %550 = vst [vmem:[#allocation2 + $0x28] sm:$0xff] %v5761_v4  ;;  %551 = vst [vmem:[#allocation2 + $0x38] sm:$0xff] %v5761_v4 }
  0x7a PF: > { %v4905_v5 = vld [vmem:[%s5963_s21 + $0xe4] ss:$16 sps:$4 sm:$0xff]   ;;  %v4909_v7 = vld [vmem:[%s5963_s21 + $0xe0] ss:$16 sps:$4 sm:$0xff]   ;;  %v5006_v56 = vld [vmem:[%s5961_s25 + $0xc] ss:$16 sps:$4 sm:$0xff]  }
  0x7b   : > { %v4907_v6 = vld [vmem:[%s5963_s21 + $0x2e4] ss:$16 sps:$4 sm:$0xff]   ;;  %1352 = vmatprep.subr.bf16.mxu0 %v4905_v5  ;;  %v4910_v8 = vld [vmem:[%s5963_s21 + $0x2e0] ss:$16 sps:$4 sm:$0xff]   ;;  %1427 = vmatprep.mubr.bf16.mxu1 %v5006_v56  ;;  %p4466_p7 = scmp.ne.s32.totalorder %s5851_s29, 1 }
  0x7c   : > { %1395 = vmatprep.subr.bf16.mxu1 %v4907_v6  ;;  %v4911_v9 = vld [vmem:[%s5963_s21 + $0xc4] ss:$16 sps:$4 sm:$0xff]   ;;  %1353 = vmatpush1.bf16.msra.mxu0 %v4909_v7  ;;  %v4915_v11 = vld [vmem:[%s5963_s21 + $0xc0] ss:$16 sps:$4 sm:$0xff]   ;;  %v5009_v7 = vld [vmem:[%s5963_s21 + $0xec] ss:$16 sps:$4 sm:$0xff]  }
  0x7d   : > { %1396 = vmatpush1.bf16.msra.mxu1 %v4910_v8  ;;  %v4913_v10 = vld [vmem:[%s5963_s21 + $0x2c4] ss:$16 sps:$4 sm:$0xff]   ;;  %1354 = vmatprep.subr.bf16.mxu0 %v4911_v9  ;;  %v4916_v12 = vld [vmem:[%s5963_s21 + $0x2c0] ss:$16 sps:$4 sm:$0xff]   ;;  %v5012_v8 = vld [vmem:[%s5963_s21 + $0x2ec] ss:$16 sps:$4 sm:$0xff]  }
  0x7e   : > { %1397 = vmatprep.subr.bf16.mxu1 %v4913_v10  ;;  %v4917_v13 = vld [vmem:[%s5963_s21 + $0xa4] ss:$16 sps:$4 sm:$0xff]   ;;  %v4921_v15 = vld [vmem:[%s5963_s21 + $0xa0] ss:$16 sps:$4 sm:$0xff]   ;;  %v6051_v10 = vld [vmem:[%s5961_s25 + $0x8] ss:$16 sps:$4 sm:$0xff]  }
  0x7f   : > { %v4919_v14 = vld [vmem:[%s5963_s21 + $0x2a4] ss:$16 sps:$4 sm:$0xff]   ;;  %v4922_v16 = vld [vmem:[%s5963_s21 + $0x2a0] ss:$16 sps:$4 sm:$0xff]  }
  0x80   : > { %1355 = vmatpush1.bf16.msra.mxu0 %v4915_v11  ;;  %v4923_v17 = vld [vmem:[%s5963_s21 + $0x84] ss:$16 sps:$4 sm:$0xff]   ;;  %v4927_v19 = vld [vmem:[%s5963_s21 + $0x80] ss:$16 sps:$4 sm:$0xff]   ;;  %v5007_v11 = vld [vmem:[%s5963_s21 + $0xe8] ss:$16 sps:$4 sm:$0xff]  }
  0x81   : > { %1398 = vmatpush1.bf16.msra.mxu1 %v4916_v12  ;;  %1356 = vmatprep.subr.bf16.mxu0 %v4917_v13  ;;  %v4925_v18 = vld [vmem:[%s5963_s21 + $0x284] ss:$16 sps:$4 sm:$0xff]   ;;  %v4928_v20 = vld [vmem:[%s5963_s21 + $0x280] ss:$16 sps:$4 sm:$0xff]   ;;  %v5010_v12 = vld [vmem:[%s5963_s21 + $0x2e8] ss:$16 sps:$4 sm:$0xff]  }
  0x82   : > { %1399 = vmatprep.subr.bf16.mxu1 %v4919_v14  ;;  %v4929_v21 = vld [vmem:[%s5963_s21 + $0x64] ss:$16 sps:$4 sm:$0xff]   ;;  %v4933_v23 = vld [vmem:[%s5963_s21 + $0x60] ss:$16 sps:$4 sm:$0xff]   ;;  %v5015_v13 = vld [vmem:[%s5963_s21 + $0xcc] ss:$16 sps:$4 sm:$0xff]  }
  0x83   : > { %v4931_v22 = vld [vmem:[%s5963_s21 + $0x264] ss:$16 sps:$4 sm:$0xff]   ;;  %v4934_v24 = vld [vmem:[%s5963_s21 + $0x260] ss:$16 sps:$4 sm:$0xff]   ;;  %v5018_v14 = vld [vmem:[%s5963_s21 + $0x2cc] ss:$16 sps:$4 sm:$0xff]  }
  0x84   : > { %1357 = vmatpush1.bf16.msra.mxu0 %v4921_v15  ;;  %v4935_v25 = vld [vmem:[%s5963_s21 + $0x44] ss:$16 sps:$4 sm:$0xff]   ;;  %v4939_v27 = vld [vmem:[%s5963_s21 + $0x40] ss:$16 sps:$4 sm:$0xff]   ;;  %v5013_v15 = vld [vmem:[%s5963_s21 + $0xc8] ss:$16 sps:$4 sm:$0xff]  }
  0x85   : > { %1400 = vmatpush1.bf16.msra.mxu1 %v4922_v16  ;;  %1358 = vmatprep.subr.bf16.mxu0 %v4923_v17  ;;  %v4937_v26 = vld [vmem:[%s5963_s21 + $0x244] ss:$16 sps:$4 sm:$0xff]   ;;  %v4940_v28 = vld [vmem:[%s5963_s21 + $0x240] ss:$16 sps:$4 sm:$0xff]   ;;  %v5016_v16 = vld [vmem:[%s5963_s21 + $0x2c8] ss:$16 sps:$4 sm:$0xff]  }
  0x86   : > { %1401 = vmatprep.subr.bf16.mxu1 %v4925_v18  ;;  %v4941_v29 = vld [vmem:[%s5963_s21 + $0x24] ss:$16 sps:$4 sm:$0xff]   ;;  %v4945_v31 = vld [vmem:[%s5963_s21 + $0x20] ss:$16 sps:$4 sm:$0xff]   ;;  %v5021_v17 = vld [vmem:[%s5963_s21 + $0xac] ss:$16 sps:$4 sm:$0xff]  }
  0x87   : > { %v4943_v30 = vld [vmem:[%s5963_s21 + $0x224] ss:$16 sps:$4 sm:$0xff]   ;;  %v4946_v32 = vld [vmem:[%s5963_s21 + $0x220] ss:$16 sps:$4 sm:$0xff]   ;;  %v5024_v18 = vld [vmem:[%s5963_s21 + $0x2ac] ss:$16 sps:$4 sm:$0xff]  }
  0x88   : > { %1359 = vmatpush1.bf16.msra.mxu0 %v4927_v19  ;;  %v4947_v33 = vld [vmem:[%s5963_s21 + $0x4] ss:$16 sps:$4 sm:$0xff]   ;;  %v4951_v35 = vld [vmem:[%s5963_s21] ss:$16 sps:$4 sm:$0xff]   ;;  %v5019_v19 = vld [vmem:[%s5963_s21 + $0xa8] ss:$16 sps:$4 sm:$0xff]  }
  0x89   : > { %1402 = vmatpush1.bf16.msra.mxu1 %v4928_v20  ;;  %1360 = vmatprep.subr.bf16.mxu0 %v4929_v21  ;;  %v4949_v34 = vld [vmem:[%s5963_s21 + $0x204] ss:$16 sps:$4 sm:$0xff]   ;;  %v4952_v36 = vld [vmem:[%s5963_s21 + $0x200] ss:$16 sps:$4 sm:$0xff]   ;;  %v5022_v20 = vld [vmem:[%s5963_s21 + $0x2a8] ss:$16 sps:$4 sm:$0xff]  }
  0x8a   : > { %1403 = vmatprep.subr.bf16.mxu1 %v4931_v22  ;;  %v4953_v37 = vld [vmem:[%s5963_s21 + $0x1e4] ss:$16 sps:$4 sm:$0xff]   ;;  %v4957_v39 = vld [vmem:[%s5963_s21 + $0x1e0] ss:$16 sps:$4 sm:$0xff]   ;;  %v5027_v21 = vld [vmem:[%s5963_s21 + $0x8c] ss:$16 sps:$4 sm:$0xff]  }
  0x8b   : > { %v4955_v38 = vld [vmem:[%s5963_s21 + $0x3e4] ss:$16 sps:$4 sm:$0xff]   ;;  %v4958_v40 = vld [vmem:[%s5963_s21 + $0x3e0] ss:$16 sps:$4 sm:$0xff]   ;;  %v5030_v22 = vld [vmem:[%s5963_s21 + $0x28c] ss:$16 sps:$4 sm:$0xff]  }
  0x8c   : > { %1361 = vmatpush1.bf16.msra.mxu0 %v4933_v23  ;;  %v4959_v41 = vld [vmem:[%s5963_s21 + $0x1c4] ss:$16 sps:$4 sm:$0xff]   ;;  %v4963_v43 = vld [vmem:[%s5963_s21 + $0x1c0] ss:$16 sps:$4 sm:$0xff]   ;;  %v5025_v23 = vld [vmem:[%s5963_s21 + $0x88] ss:$16 sps:$4 sm:$0xff]  }
  0x8d   : > { %1404 = vmatpush1.bf16.msra.mxu1 %v4934_v24  ;;  %1362 = vmatprep.subr.bf16.mxu0 %v4935_v25  ;;  %v4961_v42 = vld [vmem:[%s5963_s21 + $0x3c4] ss:$16 sps:$4 sm:$0xff]   ;;  %v4964_v44 = vld [vmem:[%s5963_s21 + $0x3c0] ss:$16 sps:$4 sm:$0xff]   ;;  %v5028_v24 = vld [vmem:[%s5963_s21 + $0x288] ss:$16 sps:$4 sm:$0xff]  }
  0x8e   : > { %1405 = vmatprep.subr.bf16.mxu1 %v4937_v26  ;;  %v4965_v45 = vld [vmem:[%s5963_s21 + $0x1a4] ss:$16 sps:$4 sm:$0xff]   ;;  %v4969_v47 = vld [vmem:[%s5963_s21 + $0x1a0] ss:$16 sps:$4 sm:$0xff]   ;;  %v5033_v25 = vld [vmem:[%s5963_s21 + $0x6c] ss:$16 sps:$4 sm:$0xff]  }
  0x8f   : > { %v4967_v46 = vld [vmem:[%s5963_s21 + $0x3a4] ss:$16 sps:$4 sm:$0xff]   ;;  %v4970_v48 = vld [vmem:[%s5963_s21 + $0x3a0] ss:$16 sps:$4 sm:$0xff]   ;;  %v5036_v26 = vld [vmem:[%s5963_s21 + $0x26c] ss:$16 sps:$4 sm:$0xff]  }
  0x90   : > { %1363 = vmatpush1.bf16.msra.mxu0 %v4939_v27  ;;  %v4971_v49 = vld [vmem:[%s5963_s21 + $0x184] ss:$16 sps:$4 sm:$0xff]   ;;  %v4975_v51 = vld [vmem:[%s5963_s21 + $0x180] ss:$16 sps:$4 sm:$0xff]   ;;  %v5031_v27 = vld [vmem:[%s5963_s21 + $0x68] ss:$16 sps:$4 sm:$0xff]  }
  0x91   : > { %1406 = vmatpush1.bf16.msra.mxu1 %v4940_v28  ;;  %1364 = vmatprep.subr.bf16.mxu0 %v4941_v29  ;;  %v4973_v50 = vld [vmem:[%s5963_s21 + $0x384] ss:$16 sps:$4 sm:$0xff]   ;;  %v4976_v52 = vld [vmem:[%s5963_s21 + $0x380] ss:$16 sps:$4 sm:$0xff]   ;;  %v5034_v28 = vld [vmem:[%s5963_s21 + $0x268] ss:$16 sps:$4 sm:$0xff]  }
  0x92   : > { %1407 = vmatprep.subr.bf16.mxu1 %v4943_v30  ;;  %v4977_v53 = vld [vmem:[%s5963_s21 + $0x164] ss:$16 sps:$4 sm:$0xff]   ;;  %v4981_v57 = vld [vmem:[%s5963_s21 + $0x160] ss:$16 sps:$4 sm:$0xff]   ;;  %v5039_v29 = vld [vmem:[%s5963_s21 + $0x4c] ss:$16 sps:$4 sm:$0xff]  }
  0x93   : > { %v5003_v54 = vld [vmem:[%s5961_s25 + $0x4] ss:$16 sps:$4 sm:$0xff]   ;;  %v4982_v58 = vld [vmem:[%s5963_s21 + $0x360] ss:$16 sps:$4 sm:$0xff]   ;;  %v5042_v30 = vld [vmem:[%s5963_s21 + $0x24c] ss:$16 sps:$4 sm:$0xff]  }
  0x94   : > { %1365 = vmatpush1.bf16.msra.mxu0 %v4945_v31  ;;  %v4979_v55 = vld [vmem:[%s5963_s21 + $0x364] ss:$16 sps:$4 sm:$0xff]   ;;  %1384 = vmatprep.mubr.bf16.mxu0 %v5003_v54  ;;  %v4987_v61 = vld [vmem:[%s5963_s21 + $0x140] ss:$16 sps:$4 sm:$0xff]   ;;  %v5037_v31 = vld [vmem:[%s5963_s21 + $0x48] ss:$16 sps:$4 sm:$0xff]  }
  0x95   : > { %1408 = vmatpush1.bf16.msra.mxu1 %v4946_v32  ;;  %1366 = vmatprep.subr.bf16.mxu0 %v4947_v33  ;;  %v4983_v59 = vld [vmem:[%s5963_s21 + $0x144] ss:$16 sps:$4 sm:$0xff]   ;;  %v4988_v62 = vld [vmem:[%s5963_s21 + $0x340] ss:$16 sps:$4 sm:$0xff]   ;;  %v5040_v32 = vld [vmem:[%s5963_s21 + $0x248] ss:$16 sps:$4 sm:$0xff]  }
  0x96   : > { %1409 = vmatprep.subr.bf16.mxu1 %v4949_v34  ;;  %v4985_v60 = vld [vmem:[%s5963_s21 + $0x344] ss:$16 sps:$4 sm:$0xff]   ;;  %v4993_v1 = vld [vmem:[%s5963_s21 + $0x120] ss:$16 sps:$4 sm:$0xff]   ;;  %v5045_v33 = vld [vmem:[%s5963_s21 + $0x2c] ss:$16 sps:$4 sm:$0xff]  }
  0x97   : > { %v4989_v63 = vld [vmem:[%s5963_s21 + $0x124] ss:$16 sps:$4 sm:$0xff]   ;;  %v4994_v2 = vld [vmem:[%s5963_s21 + $0x320] ss:$16 sps:$4 sm:$0xff]   ;;  %v5048_v34 = vld [vmem:[%s5963_s21 + $0x22c] ss:$16 sps:$4 sm:$0xff]  }
  0x98   : > { %1367 = vmatpush1.bf16.msra.mxu0 %v4951_v35  ;;  %v4991_v0 = vld [vmem:[%s5963_s21 + $0x324] ss:$16 sps:$4 sm:$0xff]   ;;  %v4999_v5 = vld [vmem:[%s5963_s21 + $0x100] ss:$16 sps:$4 sm:$0xff]   ;;  %v5043_v35 = vld [vmem:[%s5963_s21 + $0x28] ss:$16 sps:$4 sm:$0xff]  }
  0x99   : > { %1410 = vmatpush1.bf16.msra.mxu1 %v4952_v36  ;;  %1368 = vmatprep.subr.bf16.mxu0 %v4953_v37  ;;  %v4995_v3 = vld [vmem:[%s5963_s21 + $0x104] ss:$16 sps:$4 sm:$0xff]   ;;  %v5000_v6 = vld [vmem:[%s5963_s21 + $0x300] ss:$16 sps:$4 sm:$0xff]   ;;  %v5046_v36 = vld [vmem:[%s5963_s21 + $0x228] ss:$16 sps:$4 sm:$0xff]  }
  0x9a   : > { %1411 = vmatprep.subr.bf16.mxu1 %v4955_v38  ;;  %v4997_v4 = vld [vmem:[%s5963_s21 + $0x304] ss:$16 sps:$4 sm:$0xff]   ;;  %v6048_v9 = vld [vmem:[%s5961_s25] ss:$16 sps:$4 sm:$0xff]   ;;  %v5051_v37 = vld [vmem:[%s5963_s21 + $0xc] ss:$16 sps:$4 sm:$0xff]  }
  0x9b   : > { %v5054_v38 = vld [vmem:[%s5963_s21 + $0x20c] ss:$16 sps:$4 sm:$0xff]   ;;  %s6288_s25 = sld [smem:[#allocation17_spill]] (!%p4466_p7) }
  0x9c   : > { %1369 = vmatpush2.bf16.msra.mxu0 %v4957_v39  ;;  %v5049_v39 = vld [vmem:[%s5963_s21 + $0x8] ss:$16 sps:$4 sm:$0xff]  }
  0x9d   : > { %1412 = vmatpush2.bf16.msra.mxu1 %v4958_v40  ;;  %1370 = vmatprep.subr.bf16.mxu0 %v4959_v41  ;;  %v5052_v40 = vld [vmem:[%s5963_s21 + $0x208] ss:$16 sps:$4 sm:$0xff]   ;;  %v5057_v41 = vld [vmem:[%s5963_s21 + $0x1ec] ss:$16 sps:$4 sm:$0xff]  }
  0x9e   : > { %1413 = vmatprep.subr.bf16.mxu1 %v4961_v42  ;;  %v5060_v42 = vld [vmem:[%s5963_s21 + $0x3ec] ss:$16 sps:$4 sm:$0xff]  }
  0xa0   : > { %1371 = vmatpush2.bf16.msra.mxu0 %v4963_v43  ;;  %v5055_v43 = vld [vmem:[%s5963_s21 + $0x1e8] ss:$16 sps:$4 sm:$0xff]  }
  0xa1   : > { %1414 = vmatpush2.bf16.msra.mxu1 %v4964_v44  ;;  %1372 = vmatprep.subr.bf16.mxu0 %v4965_v45  ;;  %v5058_v44 = vld [vmem:[%s5963_s21 + $0x3e8] ss:$16 sps:$4 sm:$0xff]   ;;  %v5063_v45 = vld [vmem:[%s5963_s21 + $0x1cc] ss:$16 sps:$4 sm:$0xff]   ;;  %s6289_s14 = smov (!%p4466_p7), %s6288_s25 }
  0xa2   : > { %1415 = vmatprep.subr.bf16.mxu1 %v4967_v46  ;;  %v5066_v46 = vld [vmem:[%s5963_s21 + $0x3cc] ss:$16 sps:$4 sm:$0xff]  }
  0xa4   : > { %1373 = vmatpush2.bf16.msra.mxu0 %v4969_v47  ;;  %v5061_v47 = vld [vmem:[%s5963_s21 + $0x1c8] ss:$16 sps:$4 sm:$0xff]  }
  0xa5   : > { %1416 = vmatpush2.bf16.msra.mxu1 %v4970_v48  ;;  %1374 = vmatprep.subr.bf16.mxu0 %v4971_v49  ;;  %v5064_v48 = vld [vmem:[%s5963_s21 + $0x3c8] ss:$16 sps:$4 sm:$0xff]   ;;  %v5069_v49 = vld [vmem:[%s5963_s21 + $0x1ac] ss:$16 sps:$4 sm:$0xff]  }
  0xa6   : > { %1417 = vmatprep.subr.bf16.mxu1 %v4973_v50  ;;  %v5072_v50 = vld [vmem:[%s5963_s21 + $0x3ac] ss:$16 sps:$4 sm:$0xff]  }
  0xa8   : > { %1375 = vmatpush2.bf16.msra.mxu0 %v4975_v51  ;;  %v5067_v51 = vld [vmem:[%s5963_s21 + $0x1a8] ss:$16 sps:$4 sm:$0xff]  }
  0xa9   : > { %1418 = vmatpush2.bf16.msra.mxu1 %v4976_v52  ;;  %1376 = vmatprep.subr.bf16.mxu0 %v4977_v53  ;;  %v5070_v52 = vld [vmem:[%s5963_s21 + $0x3a8] ss:$16 sps:$4 sm:$0xff]   ;;  %v5075_v53 = vld [vmem:[%s5963_s21 + $0x18c] ss:$16 sps:$4 sm:$0xff]  }
  0xaa   : > { %1419 = vmatprep.subr.bf16.mxu1 %v4979_v55  ;;  %v5073_v55 = vld [vmem:[%s5963_s21 + $0x188] ss:$16 sps:$4 sm:$0xff]  }
  0xac   : > { %1377 = vmatpush2.bf16.msra.mxu0 %v4981_v57  ;;  %v5081_v57 = vld [vmem:[%s5963_s21 + $0x16c] ss:$16 sps:$4 sm:$0xff]  }
  0xad   : > { %1420 = vmatpush2.bf16.msra.mxu1 %v4982_v58  ;;  %1378 = vmatprep.subr.bf16.mxu0 %v4983_v59  ;;  %v5084_v58 = vld [vmem:[%s5963_s21 + $0x36c] ss:$16 sps:$4 sm:$0xff]   ;;  %v5079_v59 = vld [vmem:[%s5963_s21 + $0x168] ss:$16 sps:$4 sm:$0xff]  }
  0xae   : > { %1421 = vmatprep.subr.bf16.mxu1 %v4985_v60  ;;  %v5082_v60 = vld [vmem:[%s5963_s21 + $0x368] ss:$16 sps:$4 sm:$0xff]  }
  0xb0   : > { %1379 = vmatpush2.bf16.msra.mxu0 %v4987_v61  ;;  %v5087_v61 = vld [vmem:[%s5963_s21 + $0x14c] ss:$16 sps:$4 sm:$0xff]  }
  0xb1   : > { %1422 = vmatpush2.bf16.msra.mxu1 %v4988_v62  ;;  %1380 = vmatprep.subr.bf16.mxu0 %v4989_v63  ;;  %v5090_v62 = vld [vmem:[%s5963_s21 + $0x34c] ss:$16 sps:$4 sm:$0xff]   ;;  %v5085_v63 = vld [vmem:[%s5963_s21 + $0x148] ss:$16 sps:$4 sm:$0xff]  }
  0xb2   : > { %1423 = vmatprep.subr.bf16.mxu1 %v4991_v0  ;;  %v5088_v0 = vld [vmem:[%s5963_s21 + $0x348] ss:$16 sps:$4 sm:$0xff]  }
  0xb4   : > { %1381 = vmatpush2.bf16.msra.mxu0 %v4993_v1  ;;  %v5093_v1 = vld [vmem:[%s5963_s21 + $0x12c] ss:$16 sps:$4 sm:$0xff]  }
  0xb5   : > { %1424 = vmatpush2.bf16.msra.mxu1 %v4994_v2  ;;  %1382 = vmatprep.subr.bf16.mxu0 %v4995_v3  ;;  %v5096_v2 = vld [vmem:[%s5963_s21 + $0x32c] ss:$16 sps:$4 sm:$0xff]   ;;  %v5091_v3 = vld [vmem:[%s5963_s21 + $0x128] ss:$16 sps:$4 sm:$0xff]  }
  0xb6   : > { %1425 = vmatprep.subr.bf16.mxu1 %v4997_v4  ;;  %v5094_v4 = vld [vmem:[%s5963_s21 + $0x328] ss:$16 sps:$4 sm:$0xff]  }
  0xb8   : > { %1383 = vmatpush2.bf16.msra.mxu0 %v4999_v5  ;;  %v5099_v5 = vld [vmem:[%s5963_s21 + $0x10c] ss:$16 sps:$4 sm:$0xff]  }
  0xb9   : > { %1426 = vmatpush2.bf16.msra.mxu1 %v5000_v6  ;;  %1438 = vmatprep.subr.bf16.mxu0 %v5009_v7  ;;  %v5102_v6 = vld [vmem:[%s5963_s21 + $0x30c] ss:$16 sps:$4 sm:$0xff]   ;;  %v5097_v7 = vld [vmem:[%s5963_s21 + $0x108] ss:$16 sps:$4 sm:$0xff]  }
  0xba   : > { %1481 = vmatprep.subr.bf16.mxu1 %v5012_v8  ;;  %v5100_v8 = vld [vmem:[%s5963_s21 + $0x308] ss:$16 sps:$4 sm:$0xff]  }
  0xbb   : > { %1385 = vmatmul.mubr.bf16.vlgmr.msra.gmra.mxu0 %v6048_v9 }
  0xbc   : > { %1428 = vmatmul.mubr.bf16.vlgmr.msra.gmra.mxu1 %v6051_v10  ;;  %1439 = vmatpush1.bf16.msra.mxu0 %v5007_v11 }
  0xbd   : > { %1482 = vmatpush1.bf16.msra.mxu1 %v5010_v12  ;;  %1440 = vmatprep.subr.bf16.mxu0 %v5015_v13  ;;  %v552_v12 = vld [vmem:[#allocation2 + $0x30] sm:$0xff] }
  0xbe   : > { %1483 = vmatprep.subr.bf16.mxu1 %v5018_v14  ;;  %1470 = vmatprep.mubr.bf16.mxu0 %v5003_v54  ;;  %v5078_v54 = vld [vmem:[%s5963_s21 + $0x38c] ss:$16 sps:$4 sm:$0xff]  }
  0xbf   : > { %1513 = vmatprep.mubr.bf16.mxu1 %v5006_v56  ;;  %v5076_v56 = vld [vmem:[%s5963_s21 + $0x388] ss:$16 sps:$4 sm:$0xff]  }
  0xc0   : > { %1441 = vmatpush1.bf16.msra.mxu0 %v5013_v15 }
  0xc1   : > { %1484 = vmatpush1.bf16.msra.mxu1 %v5016_v16  ;;  %1442 = vmatprep.subr.bf16.mxu0 %v5021_v17  ;;  %v553_v16 = vld [vmem:[#allocation2] sm:$0xff] }
  0xc2   : > { %1485 = vmatprep.subr.bf16.mxu1 %v5024_v18 }
  0xc4   : > { %1443 = vmatpush1.bf16.msra.mxu0 %v5019_v19 }
  0xc5   : > { %1486 = vmatpush1.bf16.msra.mxu1 %v5022_v20  ;;  %1444 = vmatprep.subr.bf16.mxu0 %v5027_v21  ;;  %v556_v21 = vld [vmem:[#allocation2 + $0x8] sm:$0xff] }
  0xc6   : > { %1487 = vmatprep.subr.bf16.mxu1 %v5030_v22 }
  0xc8   : > { %1445 = vmatpush1.bf16.msra.mxu0 %v5025_v23 }
  0xc9   : > { %1488 = vmatpush1.bf16.msra.mxu1 %v5028_v24  ;;  %1446 = vmatprep.subr.bf16.mxu0 %v5033_v25 }
  0xca   : > { %1489 = vmatprep.subr.bf16.mxu1 %v5036_v26  ;;  %v557_v26 = vld [vmem:[#allocation2 + $0x20] sm:$0xff] }
  0xcc   : > { %1447 = vmatpush1.bf16.msra.mxu0 %v5031_v27 }
  0xcd   : > { %1490 = vmatpush1.bf16.msra.mxu1 %v5034_v28  ;;  %1448 = vmatprep.subr.bf16.mxu0 %v5039_v29 }
  0xce   : > { %1491 = vmatprep.subr.bf16.mxu1 %v5042_v30  ;;  %v554_v30 = vld [vmem:[#allocation2 + $0x18] sm:$0xff] }
  0xd0   : > { %1449 = vmatpush1.bf16.msra.mxu0 %v5037_v31 }
  0xd1   : > { %1492 = vmatpush1.bf16.msra.mxu1 %v5040_v32  ;;  %1450 = vmatprep.subr.bf16.mxu0 %v5045_v33 }
  0xd2   : > { %1493 = vmatprep.subr.bf16.mxu1 %v5048_v34  ;;  %v555_v34 = vld [vmem:[#allocation2 + $0x10] sm:$0xff] }
  0xd4   : > { %1451 = vmatpush1.bf16.msra.mxu0 %v5043_v35 }
  0xd5   : > { %1494 = vmatpush1.bf16.msra.mxu1 %v5046_v36  ;;  %1452 = vmatprep.subr.bf16.mxu0 %v5051_v37 }
  0xd6   : > { %1495 = vmatprep.subr.bf16.mxu1 %v5054_v38 }
  0xd8   : > { %1453 = vmatpush1.bf16.msra.mxu0 %v5049_v39  ;;  %v558_v39 = vld [vmem:[#allocation2 + $0x28] sm:$0xff] }
  0xd9   : > { %1496 = vmatpush1.bf16.msra.mxu1 %v5052_v40  ;;  %1454 = vmatprep.subr.bf16.mxu0 %v5057_v41 }
  0xda   : > { %1497 = vmatprep.subr.bf16.mxu1 %v5060_v42 }
  0xdc   : > { %1455 = vmatpush2.bf16.msra.mxu0 %v5055_v43 }
  0xdd   : > { %1498 = vmatpush2.bf16.msra.mxu1 %v5058_v44  ;;  %1456 = vmatprep.subr.bf16.mxu0 %v5063_v45  ;;  %v559_v44 = vld [vmem:[#allocation2 + $0x38] sm:$0xff] }
  0xde   : > { %1499 = vmatprep.subr.bf16.mxu1 %v5066_v46 }
  0xe0   : > { %1457 = vmatpush2.bf16.msra.mxu0 %v5061_v47 }
  0xe1   : > { %1500 = vmatpush2.bf16.msra.mxu1 %v5064_v48  ;;  %1458 = vmatprep.subr.bf16.mxu0 %v5069_v49 }
  0xe2   : > { %1501 = vmatprep.subr.bf16.mxu1 %v5072_v50 }
  0xe4   : > { %1459 = vmatpush2.bf16.msra.mxu0 %v5067_v51 }
  0xe5   : > { %1502 = vmatpush2.bf16.msra.mxu1 %v5070_v52  ;;  %1460 = vmatprep.subr.bf16.mxu0 %v5075_v53 }
  0xe6   : > { %1503 = vmatprep.subr.bf16.mxu1 %v5078_v54 }
  0xe8   : > { %1461 = vmatpush2.bf16.msra.mxu0 %v5073_v55 }
  0xe9   : > { %1504 = vmatpush2.bf16.msra.mxu1 %v5076_v56  ;;  %1462 = vmatprep.subr.bf16.mxu0 %v5081_v57 }
  0xea   : > { %1505 = vmatprep.subr.bf16.mxu1 %v5084_v58 }
  0xec   : > { %1463 = vmatpush2.bf16.msra.mxu0 %v5079_v59 }
  0xed   : > { %1506 = vmatpush2.bf16.msra.mxu1 %v5082_v60  ;;  %1464 = vmatprep.subr.bf16.mxu0 %v5087_v61 }
  0xee   : > { %1507 = vmatprep.subr.bf16.mxu1 %v5090_v62 }
  0xf0   : > { %1465 = vmatpush2.bf16.msra.mxu0 %v5085_v63 }
  0xf1   : > { %1508 = vmatpush2.bf16.msra.mxu1 %v5088_v0  ;;  %1466 = vmatprep.subr.bf16.mxu0 %v5093_v1 }
  0xf2   : > { %1509 = vmatprep.subr.bf16.mxu1 %v5096_v2 }
  0xf4   : > { %1467 = vmatpush2.bf16.msra.mxu0 %v5091_v3 }
  0xf5   : > { %1510 = vmatpush2.bf16.msra.mxu1 %v5094_v4  ;;  %1468 = vmatprep.subr.bf16.mxu0 %v5099_v5 }
  0xf6   : > { %1511 = vmatprep.subr.bf16.mxu1 %v5102_v6 }
  0xf8   : > { %1469 = vmatpush2.bf16.msra.mxu0 %v5097_v7 }
  0xf9   : > { %1512 = vmatpush2.bf16.msra.mxu1 %v5100_v8 }
  0xfb   : > { %1471 = vmatmul.mubr.bf16.vlgmr.msra.gmra.mxu0 %v6048_v9 }
  0xfc   : > { %1514 = vmatmul.mubr.bf16.vlgmr.msra.gmra.mxu1 %v6051_v10 }
 0x17b   : > { %v1386_v11 = vpop.f32.mrf.mxu0 }
 0x17c   : > { %v1429_v13 = vpop.f32.mrf.mxu1 }
 0x17d   : > { %v1430_v14 = vadd.f32 %v1429_v13, %v1386_v11  ;;  %v1388_v15 = vpop.f32.mrf.mxu0 }
 0x17e   : > { %v1431_v17 = vpop.f32.mrf.mxu1 }
 0x17f   : > { %v1524_v18 = vadd.f32 %v1430_v14, %v552_v12  ;;  %v1432_v19 = vadd.f32 %v1431_v17, %v1388_v15  ;;  %v1390_v20 = vpop.f32.mrf.mxu0 }
 0x180   : > { %v1433_v22 = vpop.f32.mrf.mxu1 }
 0x181   : > { %1532 = vst [vmem:[#allocation2 + $0x30] sm:$0xff] %v1524_v18  ;;  %v1525_v23 = vadd.f32 %v1432_v19, %v553_v16  ;;  %v1434_v24 = vadd.f32 %v1433_v22, %v1390_v20  ;;  %v1392_v25 = vpop.f32.mrf.mxu0 }
 0x182   : > { %v1435_v9 = vpop.f32.mrf.mxu1 }
 0x183   : > { %1533 = vst [vmem:[#allocation2] sm:$0xff] %v1525_v23  ;;  %v1528_v10 = vadd.f32 %v1434_v24, %v556_v21  ;;  %v1436_v27 = vadd.f32 %v1435_v9, %v1392_v25 }
 0x185   : > { %1536 = vst [vmem:[#allocation2 + $0x8] sm:$0xff] %v1528_v10  ;;  %v1529_v28 = vadd.f32 %v1436_v27, %v557_v26 }
 0x187   : > { %1537 = vst [vmem:[#allocation2 + $0x20] sm:$0xff] %v1529_v28 }
 0x1bb   : > { %v1472_v29 = vpop.f32.mrf.mxu0 }
 0x1bc   : > { %v1515_v31 = vpop.f32.mrf.mxu1 }
 0x1bd   : > { %v1516_v32 = vadd.f32 %v1515_v31, %v1472_v29  ;;  %v1474_v33 = vpop.f32.mrf.mxu0 }
 0x1be   : > { %v1517_v35 = vpop.f32.mrf.mxu1 }
 0x1bf   : > { %v1526_v36 = vadd.f32 %v1516_v32, %v554_v30  ;;  %v1518_v37 = vadd.f32 %v1517_v35, %v1474_v33  ;;  %v1476_v38 = vpop.f32.mrf.mxu0 }
 0x1c0   : > { %v1519_v40 = vpop.f32.mrf.mxu1 }
 0x1c1   : > { %1534 = vst [vmem:[#allocation2 + $0x18] sm:$0xff] %v1526_v36  ;;  %v1527_v41 = vadd.f32 %v1518_v37, %v555_v34  ;;  %v1520_v42 = vadd.f32 %v1519_v40, %v1476_v38  ;;  %v1478_v43 = vpop.f32.mrf.mxu0 }
 0x1c2   : > { %v1521_v45 = vpop.f32.mrf.mxu1 }
 0x1c3   : > { %1535 = vst [vmem:[#allocation2 + $0x10] sm:$0xff] %v1527_v41  ;;  %v1530_v46 = vadd.f32 %v1520_v42, %v558_v39  ;;  %v1522_v47 = vadd.f32 %v1521_v45, %v1478_v43  ;;  %1543 = sbr.rel (%p4466_p7) target bundleno = 1491 (0x5d3), region = 119 }
 0x1c5   : > { %1538 = vst [vmem:[#allocation2 + $0x28] sm:$0xff] %v1530_v46  ;;  %v1531_v48 = vadd.f32 %v1522_v47, %v559_v44 }
 0x1c7   : > { %1539 = vst [vmem:[#allocation2 + $0x38] sm:$0xff] %v1531_v48 }
 0x1c8   : > { %v5103_v49 = vld [vmem:[#allocation6 + $0xe4] ss:$16 sps:$4 sm:$0xff]   ;;  %v5107_v51 = vld [vmem:[#allocation6 + $0xe0] ss:$16 sps:$4 sm:$0xff]   ;;  %v1554_v24 = vlaneseq }
 0x1c9   : > { %v5105_v50 = vld [vmem:[#allocation6 + $0x2e4] ss:$16 sps:$4 sm:$0xff]   ;;  %2384 = vmatprep.subr.bf16.mxu0 %v5103_v49  ;;  %v5108_v52 = vld [vmem:[#allocation6 + $0x2e0] ss:$16 sps:$4 sm:$0xff]  }
 0x1ca   : > { %2427 = vmatprep.subr.bf16.mxu1 %v5105_v50  ;;  %v5109_v53 = vld [vmem:[#allocation6 + $0xc4] ss:$16 sps:$4 sm:$0xff]   ;;  %2385 = vmatpush1.bf16.msra.mxu0 %v5107_v51  ;;  %v5113_v55 = vld [vmem:[#allocation6 + $0xc0] ss:$16 sps:$4 sm:$0xff]   ;;  %v1555_v27 = vshrl.u32 %v1554_v24, 7 }
 0x1cb   : > { %2428 = vmatpush1.bf16.msra.mxu1 %v5108_v52  ;;  %v5111_v54 = vld [vmem:[#allocation6 + $0x2c4] ss:$16 sps:$4 sm:$0xff]   ;;  %2386 = vmatprep.subr.bf16.mxu0 %v5109_v53  ;;  %v5114_v56 = vld [vmem:[#allocation6 + $0x2c0] ss:$16 sps:$4 sm:$0xff]   ;;  %v5201_v24 = vld [vmem:[#allocation6 + $0xec] ss:$16 sps:$4 sm:$0xff]  }
 0x1cc   : > { %2429 = vmatprep.subr.bf16.mxu1 %v5111_v54  ;;  %v5115_v57 = vld [vmem:[#allocation6 + $0xa4] ss:$16 sps:$4 sm:$0xff]   ;;  %v5119_v59 = vld [vmem:[#allocation6 + $0xa0] ss:$16 sps:$4 sm:$0xff]   ;;  %v6120_v32 = vsub.s32 1, %v1555_v27  ;;  %v6122_v33 = vsub.s32 3, %v1555_v27 }
 0x1cd   : > { %v5117_v58 = vld [vmem:[#allocation6 + $0x2a4] ss:$16 sps:$4 sm:$0xff]   ;;  %v5120_v60 = vld [vmem:[#allocation6 + $0x2a0] ss:$16 sps:$4 sm:$0xff]   ;;  %v6129_v52 = vsub.s32 0, %v1555_v27  ;;  %v6131_v53 = vsub.s32 2, %v1555_v27 }
 0x1ce   : > { %2387 = vmatpush1.bf16.msra.mxu0 %v5113_v55  ;;  %v5121_v61 = vld [vmem:[#allocation6 + $0x84] ss:$16 sps:$4 sm:$0xff]   ;;  %v5125_v63 = vld [vmem:[#allocation6 + $0x80] ss:$16 sps:$4 sm:$0xff]   ;;  %v1551_v42 = vld [vmem:[#allocation2 + $0x38] sm:$0xff] }
 0x1cf   : > { %2430 = vmatpush1.bf16.msra.mxu1 %v5114_v56  ;;  %2388 = vmatprep.subr.bf16.mxu0 %v5115_v57  ;;  %v5123_v62 = vld [vmem:[#allocation6 + $0x284] ss:$16 sps:$4 sm:$0xff]   ;;  %v5126_v0 = vld [vmem:[#allocation6 + $0x280] ss:$16 sps:$4 sm:$0xff]   ;;  %v5202_v27 = vld [vmem:[#allocation6 + $0x2e8] ss:$16 sps:$4 sm:$0xff]  }
 0x1d0   : > { %2431 = vmatprep.subr.bf16.mxu1 %v5117_v58  ;;  %v5127_v1 = vld [vmem:[#allocation6 + $0x64] ss:$16 sps:$4 sm:$0xff]   ;;  %v5131_v3 = vld [vmem:[#allocation6 + $0x60] ss:$16 sps:$4 sm:$0xff]  }
 0x1d1   : > { %v5129_v2 = vld [vmem:[#allocation6 + $0x264] ss:$16 sps:$4 sm:$0xff]   ;;  %v5132_v4 = vld [vmem:[#allocation6 + $0x260] ss:$16 sps:$4 sm:$0xff]  }
 0x1d2   : > { %2389 = vmatpush1.bf16.msra.mxu0 %v5119_v59  ;;  %v5133_v5 = vld [vmem:[#allocation6 + $0x44] ss:$16 sps:$4 sm:$0xff]   ;;  %v5137_v7 = vld [vmem:[#allocation6 + $0x40] ss:$16 sps:$4 sm:$0xff]  }
 0x1d3   : > { %2432 = vmatpush1.bf16.msra.mxu1 %v5120_v60  ;;  %2390 = vmatprep.subr.bf16.mxu0 %v5121_v61  ;;  %v5135_v6 = vld [vmem:[#allocation6 + $0x244] ss:$16 sps:$4 sm:$0xff]   ;;  %v5138_v8 = vld [vmem:[#allocation6 + $0x240] ss:$16 sps:$4 sm:$0xff]  }
 0x1d4   : > { %2433 = vmatprep.subr.bf16.mxu1 %v5123_v62  ;;  %v5139_v11 = vld [vmem:[#allocation6 + $0x24] ss:$16 sps:$4 sm:$0xff]   ;;  %v5143_v13 = vld [vmem:[#allocation6 + $0x20] ss:$16 sps:$4 sm:$0xff]  }
 0x1d5   : > { %v5141_v12 = vld [vmem:[#allocation6 + $0x224] ss:$16 sps:$4 sm:$0xff]   ;;  %v5144_v14 = vld [vmem:[#allocation6 + $0x220] ss:$16 sps:$4 sm:$0xff]  }
 0x1d6   : > { %2391 = vmatpush1.bf16.msra.mxu0 %v5125_v63  ;;  %v5145_v15 = vld [vmem:[#allocation6 + $0x4] ss:$16 sps:$4 sm:$0xff]   ;;  %v5149_v17 = vld [vmem:[#allocation6] ss:$16 sps:$4 sm:$0xff]  }
 0x1d7   : > { %2434 = vmatpush1.bf16.msra.mxu1 %v5126_v0  ;;  %2392 = vmatprep.subr.bf16.mxu0 %v5127_v1  ;;  %v5147_v16 = vld [vmem:[#allocation6 + $0x204] ss:$16 sps:$4 sm:$0xff]   ;;  %v5150_v18 = vld [vmem:[#allocation6 + $0x200] ss:$16 sps:$4 sm:$0xff]  }
 0x1d8   : > { %2435 = vmatprep.subr.bf16.mxu1 %v5129_v2  ;;  %v5151_v19 = vld [vmem:[#allocation6 + $0x1e4] ss:$16 sps:$4 sm:$0xff]   ;;  %v5155_v21 = vld [vmem:[#allocation6 + $0x1e0] ss:$16 sps:$4 sm:$0xff]   ;;  %v1548_v2 = vld [vmem:[#allocation2 + $0x8] sm:$0xff] }
 0x1d9   : > { %v5153_v20 = vld [vmem:[#allocation6 + $0x3e4] ss:$16 sps:$4 sm:$0xff]   ;;  %v5156_v22 = vld [vmem:[#allocation6 + $0x3e0] ss:$16 sps:$4 sm:$0xff]  }
 0x1da   : > { %2393 = vmatpush1.bf16.msra.mxu0 %v5131_v3  ;;  %v5157_v23 = vld [vmem:[#allocation6 + $0x1c4] ss:$16 sps:$4 sm:$0xff]   ;;  %v5161_v26 = vld [vmem:[#allocation6 + $0x1c0] ss:$16 sps:$4 sm:$0xff]  }
 0x1db   : > { %2436 = vmatpush1.bf16.msra.mxu1 %v5132_v4  ;;  %2394 = vmatprep.subr.bf16.mxu0 %v5133_v5  ;;  %v5159_v25 = vld [vmem:[#allocation6 + $0x3c4] ss:$16 sps:$4 sm:$0xff]   ;;  %v5162_v9 = vld [vmem:[#allocation6 + $0x3c0] ss:$16 sps:$4 sm:$0xff]   ;;  %v1546_v4 = vld [vmem:[#allocation2 + $0x18] sm:$0xff] }
 0x1dc   : > { %2437 = vmatprep.subr.bf16.mxu1 %v5135_v6  ;;  %v5163_v10 = vld [vmem:[#allocation6 + $0x1a4] ss:$16 sps:$4 sm:$0xff]   ;;  %v5167_v29 = vld [vmem:[#allocation6 + $0x1a0] ss:$16 sps:$4 sm:$0xff]   ;;  %v1550_v6 = vld [vmem:[#allocation2 + $0x28] sm:$0xff] }
 0x1dd   : > { %v5165_v28 = vld [vmem:[#allocation6 + $0x3a4] ss:$16 sps:$4 sm:$0xff]   ;;  %v5168_v30 = vld [vmem:[#allocation6 + $0x3a0] ss:$16 sps:$4 sm:$0xff]  }
 0x1de   : > { %2395 = vmatpush1.bf16.msra.mxu0 %v5137_v7  ;;  %v5169_v31 = vld [vmem:[#allocation6 + $0x184] ss:$16 sps:$4 sm:$0xff]   ;;  %v1552_v37 = vld [vmem:[%s6254_s2] sm:$0xf] }
 0x1df   : > { %2438 = vmatpush1.bf16.msra.mxu1 %v5138_v8  ;;  %2396 = vmatprep.subr.bf16.mxu0 %v5139_v11  ;;  %v5171_v34 = vld [vmem:[#allocation6 + $0x384] ss:$16 sps:$4 sm:$0xff]   ;;  %v5173_v39 = vld [vmem:[#allocation6 + $0x180] ss:$16 sps:$4 sm:$0xff]   ;;  %v1561_v41 = vrot.slane %v1552_v37, %v6120_v32  ;;  %v1569_v43 = vrot.slane %v1552_v37, %v6122_v33  ;;  %v1557_v3 = vrot.slane %v1552_v37, %v6129_v52 }
 0x1e0   : > { %2439 = vmatprep.subr.bf16.mxu1 %v5141_v12  ;;  %v1545_v35 = vld [vmem:[#allocation2] sm:$0xff]  ;;  %v1547_v38 = vld [vmem:[#allocation2 + $0x10] sm:$0xff]  ;;  %v1565_v5 = vrot.slane %v1552_v37, %v6131_v53  ;;  %v5214_v37 = vld [vmem:[#allocation6 + $0x2a8] ss:$16 sps:$4 sm:$0xff]  }
 0x1e1   : > { %v1549_v36 = vld [vmem:[#allocation2 + $0x20] sm:$0xff]  ;;  %v1575_v47 = vadd.f32 %v1561_v41, %v1545_v35  ;;  %v1577_v49 = vadd.f32 %v1569_v43, %v1547_v38  ;;  %v1581_v50 = vadd.f32 %v1569_v43, %v1551_v42  ;;  %v1544_v0 = vld [vmem:[#allocation2 + $0x30] sm:$0xff]  ;;  %v5216_v35 = vld [vmem:[#allocation6 + $0x2ac] ss:$16 sps:$4 sm:$0xff]  }
 0x1e2   : > { %2397 = vmatpush1.bf16.msra.mxu0 %v5143_v13  ;;  %v5174_v40 = vld [vmem:[#allocation6 + $0x380] ss:$16 sps:$4 sm:$0xff]   ;;  %v5175_v44 = vld [vmem:[#allocation6 + $0x164] ss:$16 sps:$4 sm:$0xff]   ;;  %v1579_v48 = vadd.f32 %v1561_v41, %v1549_v36  ;;  %v1574_v12 = vadd.f32 %v1557_v3, %v1544_v0  ;;  %v1578_v13 = vadd.f32 %v1557_v3, %v1548_v2  ;;  %v5211_v36 = vld [vmem:[#allocation6 + $0xa8] ss:$16 sps:$4 sm:$0xff]  }
 0x1e3   : > { %2440 = vmatpush1.bf16.msra.mxu1 %v5144_v14  ;;  %2398 = vmatprep.subr.bf16.mxu0 %v5145_v15  ;;  %v5177_v45 = vld [vmem:[#allocation6 + $0x364] ss:$16 sps:$4 sm:$0xff]   ;;  %v5179_v46 = vld [vmem:[#allocation6 + $0x160] ss:$16 sps:$4 sm:$0xff]   ;;  %v1583_v55 = vmax.f32 %v1575_v47, 0.0  ;;  %v1585_v57 = vmax.f32 %v1577_v49, 0.0  ;;  %v1576_v14 = vadd.f32 %v1565_v5, %v1546_v4  ;;  %v1580_v15 = vadd.f32 %v1565_v5, %v1550_v6 }
 0x1e4   : > { %2441 = vmatprep.subr.bf16.mxu1 %v5147_v16  ;;  %v5180_v51 = vld [vmem:[#allocation6 + $0x360] ss:$16 sps:$4 sm:$0xff]   ;;  %v5181_v54 = vld [vmem:[#allocation6 + $0x144] ss:$16 sps:$4 sm:$0xff]   ;;  %v1587_v56 = vmax.f32 %v1579_v48, 0.0  ;;  %v1589_v58 = vmax.f32 %v1581_v50, 0.0 }
 0x1e5   : > { %v5183_v59 = vld [vmem:[#allocation6 + $0x344] ss:$16 sps:$4 sm:$0xff]   ;;  %v5185_v60 = vld [vmem:[#allocation6 + $0x140] ss:$16 sps:$4 sm:$0xff]   ;;  %v5219_v38 = vld [vmem:[#allocation6 + $0x8c] ss:$16 sps:$4 sm:$0xff]  }
 0x1e6   : > { %2399 = vmatpush1.bf16.msra.mxu0 %v5149_v17  ;;  %v5186_v61 = vld [vmem:[#allocation6 + $0x340] ss:$16 sps:$4 sm:$0xff]   ;;  %v1591_v62 = vpack.c.bf16 %v1587_v56, %v1583_v55  ;;  %v1593_v63 = vpack.c.bf16 %v1589_v58, %v1585_v57  ;;  %v5187_v1 = vld [vmem:[#allocation6 + $0x124] ss:$16 sps:$4 sm:$0xff]   ;;  %v5220_v41 = vld [vmem:[#allocation6 + $0x288] ss:$16 sps:$4 sm:$0xff]  }
 0x1e7   : > { %2442 = vmatpush1.bf16.msra.mxu1 %v5150_v18  ;;  %2400 = vmatprep.subr.bf16.mxu0 %v5151_v19  ;;  %v5189_v7 = vld [vmem:[#allocation6 + $0x324] ss:$16 sps:$4 sm:$0xff]   ;;  %v5191_v8 = vld [vmem:[#allocation6 + $0x120] ss:$16 sps:$4 sm:$0xff]   ;;  %v5225_v42 = vld [vmem:[#allocation6 + $0x6c] ss:$16 sps:$4 sm:$0xff]  }
 0x1e8   : > { %2443 = vmatprep.subr.bf16.mxu1 %v5153_v20  ;;  %2416 = vmatprep.mubr.bf16.mxu0 %v1591_v62  ;;  %v5192_v11 = vld [vmem:[#allocation6 + $0x320] ss:$16 sps:$4 sm:$0xff]   ;;  %v5193_v16 = vld [vmem:[#allocation6 + $0x104] ss:$16 sps:$4 sm:$0xff]   ;;  %v1582_v20 = vmax.f32 %v1574_v12, 0.0 }
 0x1e9   : > { %2459 = vmatprep.mubr.bf16.mxu1 %v1593_v63  ;;  %v5195_v17 = vld [vmem:[#allocation6 + $0x304] ss:$16 sps:$4 sm:$0xff]   ;;  %v5197_v18 = vld [vmem:[#allocation6 + $0x100] ss:$16 sps:$4 sm:$0xff]   ;;  %v5228_v43 = vld [vmem:[#allocation6 + $0x26c] ss:$16 sps:$4 sm:$0xff]  }
 0x1ea   : > { %2401 = vmatpush2.bf16.msra.mxu0 %v5155_v21  ;;  %v5198_v19 = vld [vmem:[#allocation6 + $0x300] ss:$16 sps:$4 sm:$0xff]   ;;  %v1586_v21 = vmax.f32 %v1578_v13, 0.0  ;;  %v5234_v47 = vld [vmem:[#allocation6 + $0x24c] ss:$16 sps:$4 sm:$0xff]  }
 0x1eb   : > { %2444 = vmatpush2.bf16.msra.mxu1 %v5156_v22  ;;  %2402 = vmatprep.subr.bf16.mxu0 %v5157_v23  ;;  %v1584_v22 = vmax.f32 %v1576_v14, 0.0  ;;  %v1588_v23 = vmax.f32 %v1580_v15, 0.0  ;;  %v5229_v48 = vld [vmem:[#allocation6 + $0x48] ss:$16 sps:$4 sm:$0xff]   ;;  %v5237_v50 = vld [vmem:[#allocation6 + $0x2c] ss:$16 sps:$4 sm:$0xff]  }
 0x1ec   : > { %2445 = vmatprep.subr.bf16.mxu1 %v5159_v25  ;;  %v5204_v25 = vld [vmem:[#allocation6 + $0x2ec] ss:$16 sps:$4 sm:$0xff]   ;;  %v5232_v49 = vld [vmem:[#allocation6 + $0x248] ss:$16 sps:$4 sm:$0xff]  }
 0x1ed   : > { %v5238_v55 = vld [vmem:[#allocation6 + $0x228] ss:$16 sps:$4 sm:$0xff]   ;;  %v5243_v56 = vld [vmem:[#allocation6 + $0xc] ss:$16 sps:$4 sm:$0xff]  }
 0x1ee   : > { %2403 = vmatpush2.bf16.msra.mxu0 %v5161_v26  ;;  %v6135_v26 = vpack.c.bf16 %v1586_v21, %v1582_v20  ;;  %v5246_v57 = vld [vmem:[#allocation6 + $0x20c] ss:$16 sps:$4 sm:$0xff]   ;;  %v5241_v58 = vld [vmem:[#allocation6 + $0x8] ss:$16 sps:$4 sm:$0xff]  }
 0x1ef   : > { %2446 = vmatpush2.bf16.msra.mxu1 %v5162_v9  ;;  %2404 = vmatprep.subr.bf16.mxu0 %v5163_v10  ;;  %v6137_v9 = vpack.c.bf16 %v1588_v23, %v1584_v22  ;;  %v5199_v10 = vld [vmem:[#allocation6 + $0xe8] ss:$16 sps:$4 sm:$0xff]   ;;  %v5255_v0 = vld [vmem:[#allocation6 + $0x1cc] ss:$16 sps:$4 sm:$0xff]  }
 0x1f0   : > { %2447 = vmatprep.subr.bf16.mxu1 %v5165_v28  ;;  %v5207_v28 = vld [vmem:[#allocation6 + $0xcc] ss:$16 sps:$4 sm:$0xff]   ;;  %v5253_v2 = vld [vmem:[#allocation6 + $0x1c8] ss:$16 sps:$4 sm:$0xff]  }
 0x1f1   : > { %v5256_v3 = vld [vmem:[#allocation6 + $0x3c8] ss:$16 sps:$4 sm:$0xff]   ;;  %v5261_v4 = vld [vmem:[#allocation6 + $0x1ac] ss:$16 sps:$4 sm:$0xff]  }
 0x1f2   : > { %2405 = vmatpush2.bf16.msra.mxu0 %v5167_v29  ;;  %v5210_v29 = vld [vmem:[#allocation6 + $0x2cc] ss:$16 sps:$4 sm:$0xff]   ;;  %v5259_v6 = vld [vmem:[#allocation6 + $0x1a8] ss:$16 sps:$4 sm:$0xff]  }
 0x1f3   : > { %2448 = vmatpush2.bf16.msra.mxu1 %v5168_v30  ;;  %2406 = vmatprep.subr.bf16.mxu0 %v5169_v31  ;;  %v5205_v30 = vld [vmem:[#allocation6 + $0xc8] ss:$16 sps:$4 sm:$0xff]   ;;  %v5264_v5 = vld [vmem:[#allocation6 + $0x3ac] ss:$16 sps:$4 sm:$0xff]  }
 0x1f4   : > { %2449 = vmatprep.subr.bf16.mxu1 %v5171_v34  ;;  %v5208_v31 = vld [vmem:[#allocation6 + $0x2c8] ss:$16 sps:$4 sm:$0xff]   ;;  %v5213_v34 = vld [vmem:[#allocation6 + $0xac] ss:$16 sps:$4 sm:$0xff]  }
 0x1f5   : > { %v5265_v12 = vld [vmem:[#allocation6 + $0x188] ss:$16 sps:$4 sm:$0xff]   ;;  %v5273_v14 = vld [vmem:[#allocation6 + $0x16c] ss:$16 sps:$4 sm:$0xff]  }
 0x1f6   : > { %2407 = vmatpush2.bf16.msra.mxu0 %v5173_v39  ;;  %v5222_v39 = vld [vmem:[#allocation6 + $0x28c] ss:$16 sps:$4 sm:$0xff]   ;;  %v5268_v13 = vld [vmem:[#allocation6 + $0x388] ss:$16 sps:$4 sm:$0xff]  }
 0x1f7   : > { %2450 = vmatpush2.bf16.msra.mxu1 %v5174_v40  ;;  %2408 = vmatprep.subr.bf16.mxu0 %v5175_v44  ;;  %v5217_v40 = vld [vmem:[#allocation6 + $0x88] ss:$16 sps:$4 sm:$0xff]   ;;  %v5276_v15 = vld [vmem:[#allocation6 + $0x36c] ss:$16 sps:$4 sm:$0xff]  }
 0x1f8   : > { %2451 = vmatprep.subr.bf16.mxu1 %v5177_v45  ;;  %v5223_v44 = vld [vmem:[#allocation6 + $0x68] ss:$16 sps:$4 sm:$0xff]   ;;  %v5285_v22 = vld [vmem:[#allocation6 + $0x12c] ss:$16 sps:$4 sm:$0xff]  }
 0x1f9   : > { %v5226_v45 = vld [vmem:[#allocation6 + $0x268] ss:$16 sps:$4 sm:$0xff]   ;;  %v5288_v23 = vld [vmem:[#allocation6 + $0x32c] ss:$16 sps:$4 sm:$0xff]  }
 0x1fa   : > { %2409 = vmatpush2.bf16.msra.mxu0 %v5179_v46  ;;  %v5231_v46 = vld [vmem:[#allocation6 + $0x4c] ss:$16 sps:$4 sm:$0xff]   ;;  %v5277_v20 = vld [vmem:[#allocation6 + $0x148] ss:$16 sps:$4 sm:$0xff]  }
 0x1fb   : > { %2452 = vmatpush2.bf16.msra.mxu1 %v5180_v51  ;;  %2410 = vmatprep.subr.bf16.mxu0 %v5181_v54  ;;  %v5240_v51 = vld [vmem:[#allocation6 + $0x22c] ss:$16 sps:$4 sm:$0xff]   ;;  %v5235_v54 = vld [vmem:[#allocation6 + $0x28] ss:$16 sps:$4 sm:$0xff]  }
 0x1fc   : > { %2453 = vmatprep.subr.bf16.mxu1 %v5183_v59  ;;  %v5244_v59 = vld [vmem:[#allocation6 + $0x208] ss:$16 sps:$4 sm:$0xff]  }
 0x1fd   : > { %v5280_v21 = vld [vmem:[#allocation6 + $0x348] ss:$16 sps:$4 sm:$0xff]  }
 0x1fe   : > { %2411 = vmatpush2.bf16.msra.mxu0 %v5185_v60  ;;  %v5249_v60 = vld [vmem:[#allocation6 + $0x1ec] ss:$16 sps:$4 sm:$0xff]  }
 0x1ff   : > { %2454 = vmatpush2.bf16.msra.mxu1 %v5186_v61  ;;  %2412 = vmatprep.subr.bf16.mxu0 %v5187_v1  ;;  %v5252_v61 = vld [vmem:[#allocation6 + $0x3ec] ss:$16 sps:$4 sm:$0xff]  }
 0x200   : > { %2455 = vmatprep.subr.bf16.mxu1 %v5189_v7  ;;  %v5258_v1 = vld [vmem:[#allocation6 + $0x3cc] ss:$16 sps:$4 sm:$0xff]   ;;  %v5262_v7 = vld [vmem:[#allocation6 + $0x3a8] ss:$16 sps:$4 sm:$0xff]  }
 0x202   : > { %2413 = vmatpush2.bf16.msra.mxu0 %v5191_v8  ;;  %v5267_v8 = vld [vmem:[#allocation6 + $0x18c] ss:$16 sps:$4 sm:$0xff]  }
 0x203   : > { %2456 = vmatpush2.bf16.msra.mxu1 %v5192_v11  ;;  %2414 = vmatprep.subr.bf16.mxu0 %v5193_v16  ;;  %v5270_v11 = vld [vmem:[#allocation6 + $0x38c] ss:$16 sps:$4 sm:$0xff]   ;;  %v5271_v16 = vld [vmem:[#allocation6 + $0x168] ss:$16 sps:$4 sm:$0xff]  }
 0x204   : > { %2457 = vmatprep.subr.bf16.mxu1 %v5195_v17  ;;  %v5274_v17 = vld [vmem:[#allocation6 + $0x368] ss:$16 sps:$4 sm:$0xff]  }
 0x206   : > { %2415 = vmatpush2.bf16.msra.mxu0 %v5197_v18  ;;  %v5279_v18 = vld [vmem:[#allocation6 + $0x14c] ss:$16 sps:$4 sm:$0xff]  }
 0x207   : > { %2458 = vmatpush2.bf16.msra.mxu1 %v5198_v19  ;;  %2470 = vmatprep.subr.bf16.mxu0 %v5201_v24  ;;  %v5282_v19 = vld [vmem:[#allocation6 + $0x34c] ss:$16 sps:$4 sm:$0xff]   ;;  %v5283_v24 = vld [vmem:[#allocation6 + $0x128] ss:$16 sps:$4 sm:$0xff]  }
 0x208   : > { %2513 = vmatprep.subr.bf16.mxu1 %v5204_v25  ;;  %v5286_v25 = vld [vmem:[#allocation6 + $0x328] ss:$16 sps:$4 sm:$0xff]  }
 0x209   : > { %2417 = vmatmul.mubr.bf16.vlgmr.msra.gmra.mxu0 %v6135_v26 }
 0x20a   : > { %2460 = vmatmul.mubr.bf16.vlgmr.msra.gmra.mxu1 %v6137_v9  ;;  %2471 = vmatpush1.bf16.msra.mxu0 %v5199_v10  ;;  %v5291_v10 = vld [vmem:[#allocation6 + $0x10c] ss:$16 sps:$4 sm:$0xff]  }
 0x20b   : > { %2514 = vmatpush1.bf16.msra.mxu1 %v5202_v27  ;;  %2472 = vmatprep.subr.bf16.mxu0 %v5207_v28  ;;  %v5294_v27 = vld [vmem:[#allocation6 + $0x30c] ss:$16 sps:$4 sm:$0xff]   ;;  %v5289_v28 = vld [vmem:[#allocation6 + $0x108] ss:$16 sps:$4 sm:$0xff]  }
 0x20c   : > { %2515 = vmatprep.subr.bf16.mxu1 %v5210_v29  ;;  %2502 = vmatprep.mubr.bf16.mxu0 %v1591_v62  ;;  %v5247_v62 = vld [vmem:[#allocation6 + $0x1e8] ss:$16 sps:$4 sm:$0xff]  }
 0x20d   : > { %2545 = vmatprep.mubr.bf16.mxu1 %v1593_v63  ;;  %v5250_v63 = vld [vmem:[#allocation6 + $0x3e8] ss:$16 sps:$4 sm:$0xff]  }
 0x20e   : > { %2473 = vmatpush1.bf16.msra.mxu0 %v5205_v30  ;;  %v5292_v29 = vld [vmem:[#allocation6 + $0x308] ss:$16 sps:$4 sm:$0xff]   ;;  %v5297_v30 = vld [vmem:[#allocation8 + $0xe4] ss:$16 sps:$4 sm:$0xff]  }
 0x20f   : > { %2516 = vmatpush1.bf16.msra.mxu1 %v5208_v31  ;;  %2474 = vmatprep.subr.bf16.mxu0 %v5213_v34  ;;  %v5295_v31 = vld [vmem:[#allocation8 + $0xe0] ss:$16 sps:$4 sm:$0xff]   ;;  %v5300_v34 = vld [vmem:[#allocation8 + $0xc4] ss:$16 sps:$4 sm:$0xff]  }
 0x210   : > { %2517 = vmatprep.subr.bf16.mxu1 %v5216_v35  ;;  %v5298_v35 = vld [vmem:[#allocation8 + $0xc0] ss:$16 sps:$4 sm:$0xff]  }
 0x212   : > { %2475 = vmatpush1.bf16.msra.mxu0 %v5211_v36  ;;  %v5303_v36 = vld [vmem:[#allocation8 + $0xa4] ss:$16 sps:$4 sm:$0xff]  }
 0x213   : > { %2518 = vmatpush1.bf16.msra.mxu1 %v5214_v37  ;;  %2476 = vmatprep.subr.bf16.mxu0 %v5219_v38  ;;  %v5301_v37 = vld [vmem:[#allocation8 + $0xa0] ss:$16 sps:$4 sm:$0xff]   ;;  %v5306_v38 = vld [vmem:[#allocation8 + $0x84] ss:$16 sps:$4 sm:$0xff]  }
 0x214   : > { %2519 = vmatprep.subr.bf16.mxu1 %v5222_v39  ;;  %v5304_v39 = vld [vmem:[#allocation8 + $0x80] ss:$16 sps:$4 sm:$0xff]  }
 0x216   : > { %2477 = vmatpush1.bf16.msra.mxu0 %v5217_v40  ;;  %v5309_v40 = vld [vmem:[#allocation8 + $0x64] ss:$16 sps:$4 sm:$0xff]  }
 0x217   : > { %2520 = vmatpush1.bf16.msra.mxu1 %v5220_v41  ;;  %2478 = vmatprep.subr.bf16.mxu0 %v5225_v42  ;;  %v5307_v41 = vld [vmem:[#allocation8 + $0x60] ss:$16 sps:$4 sm:$0xff]   ;;  %v5345_v42 = vld [vmem:[#allocation8 + $0x2e4] ss:$16 sps:$4 sm:$0xff]  }
 0x218   : > { %2521 = vmatprep.subr.bf16.mxu1 %v5228_v43  ;;  %v5312_v43 = vld [vmem:[#allocation8 + $0x44] ss:$16 sps:$4 sm:$0xff]  }
 0x21a   : > { %2479 = vmatpush1.bf16.msra.mxu0 %v5223_v44  ;;  %v5349_v44 = vld [vmem:[#allocation8 + $0x2c0] ss:$16 sps:$4 sm:$0xff]  }
 0x21b   : > { %2522 = vmatpush1.bf16.msra.mxu1 %v5226_v45  ;;  %2480 = vmatprep.subr.bf16.mxu0 %v5231_v46  ;;  %v5351_v45 = vld [vmem:[#allocation8 + $0x2c4] ss:$16 sps:$4 sm:$0xff]  }
 0x21c   : > { %2523 = vmatprep.subr.bf16.mxu1 %v5234_v47  ;;  %v5315_v46 = vld [vmem:[#allocation8 + $0x24] ss:$16 sps:$4 sm:$0xff]   ;;  %v5313_v47 = vld [vmem:[#allocation8 + $0x20] ss:$16 sps:$4 sm:$0xff]  }
 0x21e   : > { %2481 = vmatpush1.bf16.msra.mxu0 %v5229_v48  ;;  %v5355_v48 = vld [vmem:[#allocation8 + $0x2a0] ss:$16 sps:$4 sm:$0xff]  }
 0x21f   : > { %2524 = vmatpush1.bf16.msra.mxu1 %v5232_v49  ;;  %2482 = vmatprep.subr.bf16.mxu0 %v5237_v50  ;;  %v5357_v49 = vld [vmem:[#allocation8 + $0x2a4] ss:$16 sps:$4 sm:$0xff]  }
 0x220   : > { %2525 = vmatprep.subr.bf16.mxu1 %v5240_v51  ;;  %v5318_v50 = vld [vmem:[#allocation8 + $0x4] ss:$16 sps:$4 sm:$0xff]   ;;  %v5316_v51 = vld [vmem:[#allocation8] ss:$16 sps:$4 sm:$0xff]  }
 0x222   : > { %2483 = vmatpush1.bf16.msra.mxu0 %v5235_v54  ;;  %v5361_v54 = vld [vmem:[#allocation8 + $0x280] ss:$16 sps:$4 sm:$0xff]  }
 0x223   : > { %2526 = vmatpush1.bf16.msra.mxu1 %v5238_v55  ;;  %2484 = vmatprep.subr.bf16.mxu0 %v5243_v56  ;;  %v5363_v55 = vld [vmem:[#allocation8 + $0x284] ss:$16 sps:$4 sm:$0xff]  }
 0x224   : > { %2527 = vmatprep.subr.bf16.mxu1 %v5246_v57  ;;  %v5321_v56 = vld [vmem:[#allocation8 + $0x1e4] ss:$16 sps:$4 sm:$0xff]   ;;  %v5319_v57 = vld [vmem:[#allocation8 + $0x1e0] ss:$16 sps:$4 sm:$0xff]  }
 0x226   : > { %2485 = vmatpush1.bf16.msra.mxu0 %v5241_v58  ;;  %v5367_v58 = vld [vmem:[#allocation8 + $0x260] ss:$16 sps:$4 sm:$0xff]  }
 0x227   : > { %2528 = vmatpush1.bf16.msra.mxu1 %v5244_v59  ;;  %2486 = vmatprep.subr.bf16.mxu0 %v5249_v60  ;;  %v5369_v59 = vld [vmem:[#allocation8 + $0x264] ss:$16 sps:$4 sm:$0xff]  }
 0x228   : > { %2529 = vmatprep.subr.bf16.mxu1 %v5252_v61  ;;  %v5324_v60 = vld [vmem:[#allocation8 + $0x1c4] ss:$16 sps:$4 sm:$0xff]   ;;  %v5322_v61 = vld [vmem:[#allocation8 + $0x1c0] ss:$16 sps:$4 sm:$0xff]  }
 0x22a   : > { %2487 = vmatpush2.bf16.msra.mxu0 %v5247_v62  ;;  %v5373_v62 = vld [vmem:[#allocation8 + $0x240] ss:$16 sps:$4 sm:$0xff]  }
 0x22b   : > { %2530 = vmatpush2.bf16.msra.mxu1 %v5250_v63  ;;  %2488 = vmatprep.subr.bf16.mxu0 %v5255_v0  ;;  %v5375_v63 = vld [vmem:[#allocation8 + $0x244] ss:$16 sps:$4 sm:$0xff]  }
 0x22c   : > { %2531 = vmatprep.subr.bf16.mxu1 %v5258_v1  ;;  %v5327_v0 = vld [vmem:[#allocation8 + $0x1a4] ss:$16 sps:$4 sm:$0xff]   ;;  %v5325_v1 = vld [vmem:[#allocation8 + $0x1a0] ss:$16 sps:$4 sm:$0xff]  }
 0x22e   : > { %2489 = vmatpush2.bf16.msra.mxu0 %v5253_v2  ;;  %v5379_v2 = vld [vmem:[#allocation8 + $0x220] ss:$16 sps:$4 sm:$0xff]  }
 0x22f   : > { %2532 = vmatpush2.bf16.msra.mxu1 %v5256_v3  ;;  %2490 = vmatprep.subr.bf16.mxu0 %v5261_v4  ;;  %v5381_v3 = vld [vmem:[#allocation8 + $0x224] ss:$16 sps:$4 sm:$0xff]  }
 0x230   : > { %2533 = vmatprep.subr.bf16.mxu1 %v5264_v5  ;;  %v5330_v4 = vld [vmem:[#allocation8 + $0x184] ss:$16 sps:$4 sm:$0xff]   ;;  %v5328_v5 = vld [vmem:[#allocation8 + $0x180] ss:$16 sps:$4 sm:$0xff]  }
 0x232   : > { %2491 = vmatpush2.bf16.msra.mxu0 %v5259_v6  ;;  %v5385_v6 = vld [vmem:[#allocation8 + $0x200] ss:$16 sps:$4 sm:$0xff]  }
 0x233   : > { %2534 = vmatpush2.bf16.msra.mxu1 %v5262_v7  ;;  %2492 = vmatprep.subr.bf16.mxu0 %v5267_v8  ;;  %v5387_v7 = vld [vmem:[#allocation8 + $0x204] ss:$16 sps:$4 sm:$0xff]  }
 0x234   : > { %2535 = vmatprep.subr.bf16.mxu1 %v5270_v11  ;;  %v5333_v8 = vld [vmem:[#allocation8 + $0x164] ss:$16 sps:$4 sm:$0xff]   ;;  %v5331_v11 = vld [vmem:[#allocation8 + $0x160] ss:$16 sps:$4 sm:$0xff]  }
 0x236   : > { %2493 = vmatpush2.bf16.msra.mxu0 %v5265_v12  ;;  %v5391_v12 = vld [vmem:[#allocation8 + $0x3e0] ss:$16 sps:$4 sm:$0xff]  }
 0x237   : > { %2536 = vmatpush2.bf16.msra.mxu1 %v5268_v13  ;;  %2494 = vmatprep.subr.bf16.mxu0 %v5273_v14  ;;  %v5393_v13 = vld [vmem:[#allocation8 + $0x3e4] ss:$16 sps:$4 sm:$0xff]  }
 0x238   : > { %2537 = vmatprep.subr.bf16.mxu1 %v5276_v15  ;;  %v5336_v14 = vld [vmem:[#allocation8 + $0x144] ss:$16 sps:$4 sm:$0xff]   ;;  %v5334_v15 = vld [vmem:[#allocation8 + $0x140] ss:$16 sps:$4 sm:$0xff]  }
 0x23a   : > { %2495 = vmatpush2.bf16.msra.mxu0 %v5271_v16  ;;  %v5397_v16 = vld [vmem:[#allocation8 + $0x3c0] ss:$16 sps:$4 sm:$0xff]  }
 0x23b   : > { %2538 = vmatpush2.bf16.msra.mxu1 %v5274_v17  ;;  %2496 = vmatprep.subr.bf16.mxu0 %v5279_v18  ;;  %v5399_v17 = vld [vmem:[#allocation8 + $0x3c4] ss:$16 sps:$4 sm:$0xff]  }
 0x23c   : > { %2539 = vmatprep.subr.bf16.mxu1 %v5282_v19  ;;  %v5339_v18 = vld [vmem:[#allocation8 + $0x124] ss:$16 sps:$4 sm:$0xff]   ;;  %v5337_v19 = vld [vmem:[#allocation8 + $0x120] ss:$16 sps:$4 sm:$0xff]  }
 0x23e   : > { %2497 = vmatpush2.bf16.msra.mxu0 %v5277_v20  ;;  %v5403_v20 = vld [vmem:[#allocation8 + $0x3a0] ss:$16 sps:$4 sm:$0xff]  }
 0x23f   : > { %2540 = vmatpush2.bf16.msra.mxu1 %v5280_v21  ;;  %2498 = vmatprep.subr.bf16.mxu0 %v5285_v22  ;;  %v5405_v21 = vld [vmem:[#allocation8 + $0x3a4] ss:$16 sps:$4 sm:$0xff]  }
 0x240   : > { %2541 = vmatprep.subr.bf16.mxu1 %v5288_v23  ;;  %v5342_v22 = vld [vmem:[#allocation8 + $0x104] ss:$16 sps:$4 sm:$0xff]   ;;  %v5340_v23 = vld [vmem:[#allocation8 + $0x100] ss:$16 sps:$4 sm:$0xff]  }
 0x242   : > { %2499 = vmatpush2.bf16.msra.mxu0 %v5283_v24  ;;  %v5409_v24 = vld [vmem:[#allocation8 + $0x380] ss:$16 sps:$4 sm:$0xff]  }
 0x243   : > { %2542 = vmatpush2.bf16.msra.mxu1 %v5286_v25  ;;  %2500 = vmatprep.subr.bf16.mxu0 %v5291_v10  ;;  %v5411_v25 = vld [vmem:[#allocation8 + $0x384] ss:$16 sps:$4 sm:$0xff]   ;;  %v5348_v10 = vld [vmem:[#allocation8 + $0xec] ss:$16 sps:$4 sm:$0xff]  }
 0x244   : > { %2543 = vmatprep.subr.bf16.mxu1 %v5294_v27  ;;  %v5415_v27 = vld [vmem:[#allocation8 + $0x360] ss:$16 sps:$4 sm:$0xff]  }
 0x246   : > { %2501 = vmatpush2.bf16.msra.mxu0 %v5289_v28  ;;  %v5417_v28 = vld [vmem:[#allocation8 + $0x364] ss:$16 sps:$4 sm:$0xff]  }
 0x247   : > { %2544 = vmatpush2.bf16.msra.mxu1 %v5292_v29  ;;  %3358 = vmatprep.subr.bf16.mxu0 %v5297_v30  ;;  %v5423_v29 = vld [vmem:[#allocation8 + $0x344] ss:$16 sps:$4 sm:$0xff]   ;;  %v5421_v30 = vld [vmem:[#allocation8 + $0x340] ss:$16 sps:$4 sm:$0xff]  }
 0x248   : > { %3401 = vmatprep.subr.bf16.mxu1 %v5345_v42 }
 0x249   : > { %2503 = vmatmul.mubr.bf16.vlgmr.msra.gmra.mxu0 %v6135_v26  ;;  %v5343_v26 = vld [vmem:[#allocation8 + $0x2e0] ss:$16 sps:$4 sm:$0xff]  }
 0x24a   : > { %2546 = vmatmul.mubr.bf16.vlgmr.msra.gmra.mxu1 %v6137_v9  ;;  %3359 = vmatpush1.bf16.msra.mxu0 %v5295_v31  ;;  %v5310_v9 = vld [vmem:[#allocation8 + $0x40] ss:$16 sps:$4 sm:$0xff]   ;;  %v5429_v31 = vld [vmem:[#allocation8 + $0x324] ss:$16 sps:$4 sm:$0xff]  }
 0x24b   : > { %3360 = vmatprep.subr.bf16.mxu0 %v5300_v34  ;;  %3402 = vmatpush1.bf16.msra.mxu1 %v5343_v26  ;;  %v5427_v34 = vld [vmem:[#allocation8 + $0x320] ss:$16 sps:$4 sm:$0xff]  }
 0x24c   : > { %3403 = vmatprep.subr.bf16.mxu1 %v5351_v45 }
 0x24e   : > { %3361 = vmatpush1.bf16.msra.mxu0 %v5298_v35  ;;  %v5435_v35 = vld [vmem:[#allocation8 + $0x304] ss:$16 sps:$4 sm:$0xff]  }
 0x24f   : > { %3362 = vmatprep.subr.bf16.mxu0 %v5303_v36  ;;  %3404 = vmatpush1.bf16.msra.mxu1 %v5349_v44  ;;  %v5433_v36 = vld [vmem:[#allocation8 + $0x300] ss:$16 sps:$4 sm:$0xff]  }
 0x250   : > { %3405 = vmatprep.subr.bf16.mxu1 %v5357_v49 }
 0x252   : > { %3363 = vmatpush1.bf16.msra.mxu0 %v5301_v37  ;;  %v5441_v37 = vld [vmem:[#allocation8 + $0x2ec] ss:$16 sps:$4 sm:$0xff]  }
 0x253   : > { %3364 = vmatprep.subr.bf16.mxu0 %v5306_v38  ;;  %3406 = vmatpush1.bf16.msra.mxu1 %v5355_v48  ;;  %v6146_v38 = vld [vmem:[%s6256_s4] sm:$0xf] }
 0x254   : > { %3407 = vmatprep.subr.bf16.mxu1 %v5363_v55 }
 0x256   : > { %3365 = vmatpush1.bf16.msra.mxu0 %v5304_v39  ;;  %v1731_v39 = vrot.slane %v6146_v38, %v6120_v32 }
 0x257   : > { %3366 = vmatprep.subr.bf16.mxu0 %v5309_v40  ;;  %3408 = vmatpush1.bf16.msra.mxu1 %v5361_v54  ;;  %v1727_v40 = vrot.slane %v6146_v38, %v6129_v52 }
 0x258   : > { %3409 = vmatprep.subr.bf16.mxu1 %v5369_v59 }
 0x25a   : > { %3367 = vmatpush1.bf16.msra.mxu0 %v5307_v41 }
 0x25b   : > { %3368 = vmatprep.subr.bf16.mxu0 %v5312_v43  ;;  %3410 = vmatpush1.bf16.msra.mxu1 %v5367_v58 }
 0x25c   : > { %3411 = vmatprep.subr.bf16.mxu1 %v5375_v63 }
 0x25e   : > { %3369 = vmatpush1.bf16.msra.mxu0 %v5310_v9 }
 0x25f   : > { %3370 = vmatprep.subr.bf16.mxu0 %v5315_v46  ;;  %3412 = vmatpush1.bf16.msra.mxu1 %v5373_v62  ;;  %v5346_v62 = vld [vmem:[#allocation8 + $0xe8] ss:$16 sps:$4 sm:$0xff]  }
 0x260   : > { %3413 = vmatprep.subr.bf16.mxu1 %v5381_v3  ;;  %v5358_v3 = vld [vmem:[#allocation8 + $0xa8] ss:$16 sps:$4 sm:$0xff]  }
 0x262   : > { %3371 = vmatpush1.bf16.msra.mxu0 %v5313_v47 }
 0x263   : > { %3372 = vmatprep.subr.bf16.mxu0 %v5318_v50  ;;  %3414 = vmatpush1.bf16.msra.mxu1 %v5379_v2  ;;  %v5360_v2 = vld [vmem:[#allocation8 + $0xac] ss:$16 sps:$4 sm:$0xff]  }
 0x264   : > { %3415 = vmatprep.subr.bf16.mxu1 %v5387_v7  ;;  %v5370_v7 = vld [vmem:[#allocation8 + $0x68] ss:$16 sps:$4 sm:$0xff]  }
 0x266   : > { %3373 = vmatpush1.bf16.msra.mxu0 %v5316_v51 }
 0x267   : > { %3374 = vmatprep.subr.bf16.mxu0 %v5321_v56  ;;  %3416 = vmatpush1.bf16.msra.mxu1 %v5385_v6  ;;  %v5372_v6 = vld [vmem:[#allocation8 + $0x6c] ss:$16 sps:$4 sm:$0xff]  }
 0x268   : > { %3417 = vmatprep.subr.bf16.mxu1 %v5393_v13  ;;  %v5382_v13 = vld [vmem:[#allocation8 + $0x28] ss:$16 sps:$4 sm:$0xff]  }
 0x26a   : > { %3375 = vmatpush2.bf16.msra.mxu0 %v5319_v57 }
 0x26b   : > { %3376 = vmatprep.subr.bf16.mxu0 %v5324_v60  ;;  %3418 = vmatpush2.bf16.msra.mxu1 %v5391_v12  ;;  %v5384_v12 = vld [vmem:[#allocation8 + $0x2c] ss:$16 sps:$4 sm:$0xff]  }
 0x26c   : > { %3419 = vmatprep.subr.bf16.mxu1 %v5399_v17  ;;  %v5394_v17 = vld [vmem:[#allocation8 + $0x1e8] ss:$16 sps:$4 sm:$0xff]  }
 0x26e   : > { %3377 = vmatpush2.bf16.msra.mxu0 %v5322_v61 }
 0x26f   : > { %3378 = vmatprep.subr.bf16.mxu0 %v5327_v0  ;;  %3420 = vmatpush2.bf16.msra.mxu1 %v5397_v16  ;;  %v5354_v0 = vld [vmem:[#allocation8 + $0xcc] ss:$16 sps:$4 sm:$0xff]  }
 0x270   : > { %3421 = vmatprep.subr.bf16.mxu1 %v5405_v21  ;;  %v5396_v16 = vld [vmem:[#allocation8 + $0x1ec] ss:$16 sps:$4 sm:$0xff]   ;;  %v5406_v21 = vld [vmem:[#allocation8 + $0x1a8] ss:$16 sps:$4 sm:$0xff]  }
 0x272   : > { %3379 = vmatpush2.bf16.msra.mxu0 %v5325_v1  ;;  %v5352_v1 = vld [vmem:[#allocation8 + $0xc8] ss:$16 sps:$4 sm:$0xff]  }
 0x273   : > { %3380 = vmatprep.subr.bf16.mxu0 %v5330_v4  ;;  %3422 = vmatpush2.bf16.msra.mxu1 %v5403_v20  ;;  %v5366_v4 = vld [vmem:[#allocation8 + $0x8c] ss:$16 sps:$4 sm:$0xff]  }
 0x274   : > { %3423 = vmatprep.subr.bf16.mxu1 %v5411_v25  ;;  %v5408_v20 = vld [vmem:[#allocation8 + $0x1ac] ss:$16 sps:$4 sm:$0xff]   ;;  %v5418_v25 = vld [vmem:[#allocation8 + $0x168] ss:$16 sps:$4 sm:$0xff]  }
 0x276   : > { %3381 = vmatpush2.bf16.msra.mxu0 %v5328_v5  ;;  %v5364_v5 = vld [vmem:[#allocation8 + $0x88] ss:$16 sps:$4 sm:$0xff]  }
 0x277   : > { %3382 = vmatprep.subr.bf16.mxu0 %v5333_v8  ;;  %3424 = vmatpush2.bf16.msra.mxu1 %v5409_v24  ;;  %v5378_v8 = vld [vmem:[#allocation8 + $0x4c] ss:$16 sps:$4 sm:$0xff]  }
 0x278   : > { %3425 = vmatprep.subr.bf16.mxu1 %v5417_v28  ;;  %v5420_v24 = vld [vmem:[#allocation8 + $0x16c] ss:$16 sps:$4 sm:$0xff]   ;;  %v1735_v28 = vrot.slane %v6146_v38, %v6131_v53 }
 0x27a   : > { %3383 = vmatpush2.bf16.msra.mxu0 %v5331_v11  ;;  %v5376_v11 = vld [vmem:[#allocation8 + $0x48] ss:$16 sps:$4 sm:$0xff]  }
 0x27b   : > { %3384 = vmatprep.subr.bf16.mxu0 %v5336_v14  ;;  %3426 = vmatpush2.bf16.msra.mxu1 %v5415_v27  ;;  %v5390_v14 = vld [vmem:[#allocation8 + $0xc] ss:$16 sps:$4 sm:$0xff]   ;;  %v1739_v27 = vrot.slane %v6146_v38, %v6122_v33 }
 0x27c   : > { %3427 = vmatprep.subr.bf16.mxu1 %v5423_v29 }
 0x27e   : > { %3385 = vmatpush2.bf16.msra.mxu0 %v5334_v15  ;;  %v5388_v15 = vld [vmem:[#allocation8 + $0x8] ss:$16 sps:$4 sm:$0xff]  }
 0x27f   : > { %3386 = vmatprep.subr.bf16.mxu0 %v5339_v18  ;;  %3428 = vmatpush2.bf16.msra.mxu1 %v5421_v30  ;;  %v5402_v18 = vld [vmem:[#allocation8 + $0x1cc] ss:$16 sps:$4 sm:$0xff]  }
 0x280   : > { %3429 = vmatprep.subr.bf16.mxu1 %v5429_v31  ;;  %v5424_v31 = vld [vmem:[#allocation8 + $0x148] ss:$16 sps:$4 sm:$0xff]  }
 0x282   : > { %3387 = vmatpush2.bf16.msra.mxu0 %v5337_v19  ;;  %v5400_v19 = vld [vmem:[#allocation8 + $0x1c8] ss:$16 sps:$4 sm:$0xff]  }
 0x283   : > { %3388 = vmatprep.subr.bf16.mxu0 %v5342_v22  ;;  %3430 = vmatpush2.bf16.msra.mxu1 %v5427_v34  ;;  %v5414_v22 = vld [vmem:[#allocation8 + $0x18c] ss:$16 sps:$4 sm:$0xff]  }
 0x284   : > { %3431 = vmatprep.subr.bf16.mxu1 %v5435_v35 }
 0x286   : > { %3389 = vmatpush2.bf16.msra.mxu0 %v5340_v23  ;;  %v5412_v23 = vld [vmem:[#allocation8 + $0x188] ss:$16 sps:$4 sm:$0xff]  }
 0x287   : > { %3444 = vmatprep.subr.bf16.mxu0 %v5348_v10  ;;  %3432 = vmatpush2.bf16.msra.mxu1 %v5433_v36  ;;  %v5426_v10 = vld [vmem:[#allocation8 + $0x14c] ss:$16 sps:$4 sm:$0xff]  }
 0x288   : > { %3487 = vmatprep.subr.bf16.mxu1 %v5441_v37  ;;  %v5432_v36 = vld [vmem:[#allocation8 + $0x12c] ss:$16 sps:$4 sm:$0xff]  }
 0x2c9   : > { %v2418_v41 = vpop.f32.mrf.mxu0 }
 0x2ca   : > { %v2461_v42 = vpop.f32.mrf.mxu1  ;;  %v2419_v44 = vadd.f32 %v2418_v41, %v1727_v40 }
 0x2cb   : > { %v2420_v43 = vpop.f32.mrf.mxu0 }
 0x2cc   : > { %v2463_v26 = vpop.f32.mrf.mxu1  ;;  %v2421_v9 = vadd.f32 %v2420_v43, %v1731_v39  ;;  %v2462_v54 = vadd.f32 %v2461_v42, %v2419_v44  ;;  %v5430_v43 = vld [vmem:[#allocation8 + $0x128] ss:$16 sps:$4 sm:$0xff]  }
 0x2cd   : > { %v2422_v45 = vpop.f32.mrf.mxu0 }
 0x2ce   : > { %v2465_v46 = vpop.f32.mrf.mxu1  ;;  %v2423_v47 = vadd.f32 %v2422_v45, %v1727_v40  ;;  %v2464_v49 = vadd.f32 %v2463_v26, %v2421_v9  ;;  %v2556_v60 = vmax.f32 %v2462_v54, 0.0  ;;  %v5438_v9 = vld [vmem:[#allocation8 + $0x10c] ss:$16 sps:$4 sm:$0xff]  }
 0x2cf   : > { %v2424_v48 = vpop.f32.mrf.mxu0 }
 0x2d0   : > { %v2466_v50 = vadd.f32 %v2465_v46, %v2423_v47  ;;  %v2425_v51 = vadd.f32 %v2424_v48, %v1731_v39  ;;  %v2467_v55 = vpop.f32.mrf.mxu1  ;;  %v2557_v58 = vmax.f32 %v2464_v49, 0.0  ;;  %v5436_v49 = vld [vmem:[#allocation8 + $0x108] ss:$16 sps:$4 sm:$0xff]  }
 0x2d2   : > { %v2468_v56 = vadd.f32 %v2467_v55, %v2425_v51  ;;  %v2560_v57 = vmax.f32 %v2466_v50, 0.0 }
 0x2d4   : > { %v2561_v59 = vmax.f32 %v2468_v56, 0.0  ;;  %v6152_v63 = vpack.c.bf16 %v2560_v57, %v2556_v60  ;;  %v5439_v57 = vld [vmem:[#allocation8 + $0x2e8] ss:$16 sps:$4 sm:$0xff]  }
 0x2d5   : > { %v5442_v60 = vld [vmem:[#allocation8 + $0x2c8] ss:$16 sps:$4 sm:$0xff]  }
 0x2d6   : > { %v2565_v61 = vpack.c.bf16 %v2561_v59, %v2557_v58  ;;  %v5444_v59 = vld [vmem:[#allocation8 + $0x2cc] ss:$16 sps:$4 sm:$0xff]  }
 0x2d8   : > { %3390 = vmatprep.mubr.bf16.mxu0 %v2565_v61 }
 0x2d9   : > { %3391 = vmatmul.mubr.bf16.vlgmr.msra.gmra.mxu0 %v6152_v63 }
 0x2da   : > { %3445 = vmatpush1.bf16.msra.mxu0 %v5346_v62  ;;  %3476 = vmatprep.mubr.bf16.mxu0 %v2565_v61  ;;  %v5447_v61 = vld [vmem:[#allocation8 + $0x2ac] ss:$16 sps:$4 sm:$0xff]   ;;  %v5445_v62 = vld [vmem:[#allocation8 + $0x2a8] ss:$16 sps:$4 sm:$0xff]  }
 0x2db   : > { %3446 = vmatprep.subr.bf16.mxu0 %v5354_v0  ;;  %v5450_v0 = vld [vmem:[#allocation8 + $0x28c] ss:$16 sps:$4 sm:$0xff]  }
 0x2de   : > { %3447 = vmatpush1.bf16.msra.mxu0 %v5352_v1  ;;  %v5487_v1 = vld [vmem:[#allocation9 + $0x70] ss:$8 sps:$4 sm:$0xff]  }
 0x2df   : > { %3448 = vmatprep.subr.bf16.mxu0 %v5360_v2  ;;  %v5489_v2 = vld [vmem:[#allocation9 + $0x74] ss:$8 sps:$4 sm:$0xff]  }
 0x2e2   : > { %3449 = vmatpush1.bf16.msra.mxu0 %v5358_v3  ;;  %v5492_v3 = vld [vmem:[#allocation9 + $0x64] ss:$8 sps:$4 sm:$0xff]  }
 0x2e3   : > { %3450 = vmatprep.subr.bf16.mxu0 %v5366_v4  ;;  %v5448_v4 = vld [vmem:[#allocation8 + $0x288] ss:$16 sps:$4 sm:$0xff]  }
 0x2e6   : > { %3451 = vmatpush1.bf16.msra.mxu0 %v5364_v5  ;;  %v5453_v5 = vld [vmem:[#allocation8 + $0x26c] ss:$16 sps:$4 sm:$0xff]  }
 0x2e7   : > { %3452 = vmatprep.subr.bf16.mxu0 %v5372_v6  ;;  %v5495_v6 = vld [vmem:[#allocation9 + $0x54] ss:$8 sps:$4 sm:$0xff]  }
 0x2ea   : > { %3453 = vmatpush1.bf16.msra.mxu0 %v5370_v7  ;;  %v5451_v7 = vld [vmem:[#allocation8 + $0x268] ss:$16 sps:$4 sm:$0xff]  }
 0x2eb   : > { %3454 = vmatprep.subr.bf16.mxu0 %v5378_v8  ;;  %v5456_v8 = vld [vmem:[#allocation8 + $0x24c] ss:$16 sps:$4 sm:$0xff]  }
 0x2ee   : > { %3455 = vmatpush1.bf16.msra.mxu0 %v5376_v11  ;;  %v5493_v11 = vld [vmem:[#allocation9 + $0x50] ss:$8 sps:$4 sm:$0xff]  }
 0x2ef   : > { %3456 = vmatprep.subr.bf16.mxu0 %v5384_v12  ;;  %v5498_v12 = vld [vmem:[#allocation9 + $0x44] ss:$8 sps:$4 sm:$0xff]  }
 0x2f2   : > { %3457 = vmatpush1.bf16.msra.mxu0 %v5382_v13  ;;  %v5454_v13 = vld [vmem:[#allocation8 + $0x248] ss:$16 sps:$4 sm:$0xff]  }
 0x2f3   : > { %3458 = vmatprep.subr.bf16.mxu0 %v5390_v14  ;;  %v5459_v14 = vld [vmem:[#allocation8 + $0x22c] ss:$16 sps:$4 sm:$0xff]  }
 0x2f6   : > { %3459 = vmatpush1.bf16.msra.mxu0 %v5388_v15  ;;  %v5496_v15 = vld [vmem:[#allocation9 + $0x40] ss:$8 sps:$4 sm:$0xff]  }
 0x2f7   : > { %3460 = vmatprep.subr.bf16.mxu0 %v5396_v16  ;;  %v5501_v16 = vld [vmem:[#allocation9 + $0x34] ss:$8 sps:$4 sm:$0xff]  }
 0x2fa   : > { %3461 = vmatpush2.bf16.msra.mxu0 %v5394_v17  ;;  %v5457_v17 = vld [vmem:[#allocation8 + $0x228] ss:$16 sps:$4 sm:$0xff]  }
 0x2fb   : > { %3462 = vmatprep.subr.bf16.mxu0 %v5402_v18  ;;  %v5462_v18 = vld [vmem:[#allocation8 + $0x20c] ss:$16 sps:$4 sm:$0xff]  }
 0x2fe   : > { %3463 = vmatpush2.bf16.msra.mxu0 %v5400_v19  ;;  %v5499_v19 = vld [vmem:[#allocation9 + $0x30] ss:$8 sps:$4 sm:$0xff]  }
 0x2ff   : > { %3464 = vmatprep.subr.bf16.mxu0 %v5408_v20  ;;  %v5504_v20 = vld [vmem:[#allocation9 + $0x24] ss:$8 sps:$4 sm:$0xff]  }
 0x302   : > { %3465 = vmatpush2.bf16.msra.mxu0 %v5406_v21  ;;  %v5460_v21 = vld [vmem:[#allocation8 + $0x208] ss:$16 sps:$4 sm:$0xff]  }
 0x303   : > { %3466 = vmatprep.subr.bf16.mxu0 %v5414_v22  ;;  %v5465_v22 = vld [vmem:[#allocation8 + $0x3ec] ss:$16 sps:$4 sm:$0xff]  }
 0x306   : > { %3467 = vmatpush2.bf16.msra.mxu0 %v5412_v23  ;;  %v5502_v23 = vld [vmem:[#allocation9 + $0x20] ss:$8 sps:$4 sm:$0xff]  }
 0x307   : > { %3468 = vmatprep.subr.bf16.mxu0 %v5420_v24  ;;  %v5507_v24 = vld [vmem:[#allocation9 + $0x14] ss:$8 sps:$4 sm:$0xff]  }
 0x309   : > { %v2504_v29 = vpop.f32.mrf.mxu0 }
 0x30a   : > { %v2547_v30 = vpop.f32.mrf.mxu1  ;;  %3469 = vmatpush2.bf16.msra.mxu0 %v5418_v25  ;;  %v2505_v39 = vadd.f32 %v2504_v29, %v1735_v28  ;;  %v5463_v25 = vld [vmem:[#allocation8 + $0x3e8] ss:$16 sps:$4 sm:$0xff]  }
 0x30b   : > { %v2506_v34 = vpop.f32.mrf.mxu0  ;;  %3470 = vmatprep.subr.bf16.mxu0 %v5426_v10  ;;  %v5468_v10 = vld [vmem:[#allocation8 + $0x3cc] ss:$16 sps:$4 sm:$0xff]   ;;  %v5466_v29 = vld [vmem:[#allocation8 + $0x3c8] ss:$16 sps:$4 sm:$0xff]  }
 0x30c   : > { %v2549_v35 = vpop.f32.mrf.mxu1  ;;  %v2507_v37 = vadd.f32 %v2506_v34, %v1739_v27  ;;  %v2548_v46 = vadd.f32 %v2547_v30, %v2505_v39  ;;  %v5471_v30 = vld [vmem:[#allocation8 + $0x3ac] ss:$16 sps:$4 sm:$0xff]  }
 0x30d   : > { %v2508_v40 = vpop.f32.mrf.mxu0  ;;  %v5513_v34 = vld [vmem:[#allocation9 + $0xf4] ss:$8 sps:$4 sm:$0xff]   ;;  %v5516_v39 = vld [vmem:[#allocation9 + $0xe4] ss:$8 sps:$4 sm:$0xff]  }
 0x30e   : > { %v2551_v41 = vpop.f32.mrf.mxu1  ;;  %v2509_v42 = vadd.f32 %v2508_v40, %v1735_v28  ;;  %3471 = vmatpush2.bf16.msra.mxu0 %v5424_v31  ;;  %v2550_v44 = vadd.f32 %v2549_v35, %v2507_v37  ;;  %v2558_v55 = vmax.f32 %v2548_v46, 0.0  ;;  %v5510_v28 = vld [vmem:[#allocation9 + $0x4] ss:$8 sps:$4 sm:$0xff]   ;;  %v5508_v31 = vld [vmem:[#allocation9] ss:$8 sps:$4 sm:$0xff]  }
 0x30f   : > { %v2510_v26 = vpop.f32.mrf.mxu0  ;;  %3472 = vmatprep.subr.bf16.mxu0 %v5432_v36  ;;  %v5469_v35 = vld [vmem:[#allocation8 + $0x3a8] ss:$16 sps:$4 sm:$0xff]   ;;  %v5474_v36 = vld [vmem:[#allocation8 + $0x38c] ss:$16 sps:$4 sm:$0xff]  }
 0x310   : > { %v2552_v38 = vadd.f32 %v2551_v41, %v2509_v42  ;;  %v2511_v45 = vadd.f32 %v2510_v26, %v1739_v27  ;;  %v2553_v47 = vpop.f32.mrf.mxu1  ;;  %v2559_v51 = vmax.f32 %v2550_v44, 0.0  ;;  %v5505_v27 = vld [vmem:[#allocation9 + $0x10] ss:$8 sps:$4 sm:$0xff]   ;;  %v5477_v41 = vld [vmem:[#allocation8 + $0x36c] ss:$16 sps:$4 sm:$0xff]  }
 0x311   : > { %v5511_v37 = vld [vmem:[#allocation9 + $0xf0] ss:$8 sps:$4 sm:$0xff]   ;;  %v5514_v42 = vld [vmem:[#allocation9 + $0xe0] ss:$8 sps:$4 sm:$0xff]   ;;  %v5483_v46 = vld [vmem:[#allocation8 + $0x32c] ss:$16 sps:$4 sm:$0xff]  }
 0x312   : > { %v2554_v48 = vadd.f32 %v2553_v47, %v2511_v45  ;;  %3473 = vmatpush2.bf16.msra.mxu0 %v5430_v43  ;;  %v2562_v50 = vmax.f32 %v2552_v38, 0.0  ;;  %v5472_v40 = vld [vmem:[#allocation8 + $0x388] ss:$16 sps:$4 sm:$0xff]   ;;  %v5519_v43 = vld [vmem:[#allocation9 + $0xd4] ss:$8 sps:$4 sm:$0xff]  }
 0x313   : > { %3474 = vmatprep.subr.bf16.mxu0 %v5438_v9  ;;  %v5475_v26 = vld [vmem:[#allocation8 + $0x368] ss:$16 sps:$4 sm:$0xff]   ;;  %v5480_v9 = vld [vmem:[#allocation8 + $0x34c] ss:$16 sps:$4 sm:$0xff]  }
 0x314   : > { %v2563_v54 = vmax.f32 %v2554_v48, 0.0  ;;  %v6159_v58 = vpack.c.bf16 %v2562_v50, %v2558_v55  ;;  %v5517_v44 = vld [vmem:[#allocation9 + $0xd0] ss:$8 sps:$4 sm:$0xff]   ;;  %v5522_v38 = vld [vmem:[#allocation9 + $0xc4] ss:$8 sps:$4 sm:$0xff]  }
 0x315   : > { %v5478_v45 = vld [vmem:[#allocation8 + $0x348] ss:$16 sps:$4 sm:$0xff]   ;;  %v5525_v48 = vld [vmem:[#allocation9 + $0xb4] ss:$8 sps:$4 sm:$0xff]   ;;  %v5528_v55 = vld [vmem:[#allocation9 + $0xa4] ss:$8 sps:$4 sm:$0xff]  }
 0x316   : > { %v2567_v56 = vpack.c.bf16 %v2563_v54, %v2559_v51  ;;  %3475 = vmatpush2.bf16.msra.mxu0 %v5436_v49  ;;  %v5520_v47 = vld [vmem:[#allocation9 + $0xc0] ss:$8 sps:$4 sm:$0xff]   ;;  %v5486_v50 = vld [vmem:[#allocation8 + $0x30c] ss:$16 sps:$4 sm:$0xff]   ;;  %v5523_v51 = vld [vmem:[#allocation9 + $0xb0] ss:$8 sps:$4 sm:$0xff]  }
 0x317   : > { %3938 = vmatprep.subr.bf16.mxu0 %v5489_v2  ;;  %v5481_v49 = vld [vmem:[#allocation8 + $0x328] ss:$16 sps:$4 sm:$0xff]  }
 0x318   : > { %3433 = vmatprep.mubr.bf16.mxu1 %v2567_v56  ;;  %v5484_v54 = vld [vmem:[#allocation8 + $0x308] ss:$16 sps:$4 sm:$0xff]  }
 0x319   : > { %3477 = vmatmul.mubr.bf16.vlgmr.msra.gmra.mxu0 %v6152_v63  ;;  %3434 = vmatmul.mubr.bf16.vlgmr.msra.gmra.mxu1 %v6159_v58  ;;  %v5490_v63 = vld [vmem:[#allocation9 + $0x60] ss:$8 sps:$4 sm:$0xff]  }
 0x31a   : > { %3488 = vmatpush1.bf16.msra.mxu1 %v5439_v57  ;;  %3519 = vmatprep.mubr.bf16.mxu1 %v2567_v56  ;;  %v5526_v56 = vld [vmem:[#allocation9 + $0xa0] ss:$8 sps:$4 sm:$0xff]   ;;  %v5531_v57 = vld [vmem:[#allocation9 + $0x94] ss:$8 sps:$4 sm:$0xff]  }
 0x31b   : > { %3489 = vmatprep.subr.bf16.mxu1 %v5444_v59  ;;  %3939 = vmatpush1.bf16.msra.mxu0 %v5487_v1  ;;  %v5529_v59 = vld [vmem:[#allocation9 + $0x90] ss:$8 sps:$4 sm:$0xff]   ;;  %v5540_v1 = vld [vmem:[#allocation9 + $0x164] ss:$8 sps:$4 sm:$0xff]   ;;  %v5538_v2 = vld [vmem:[#allocation9 + $0x160] ss:$8 sps:$4 sm:$0xff]  }
 0x31c   : > { %3940 = vmatprep.subr.bf16.mxu0 %v5492_v3  ;;  %v5541_v3 = vld [vmem:[#allocation9 + $0x150] ss:$8 sps:$4 sm:$0xff]  }
 0x31e   : > { %3490 = vmatpush1.bf16.msra.mxu1 %v5442_v60  ;;  %v5534_v60 = vld [vmem:[#allocation9 + $0x84] ss:$8 sps:$4 sm:$0xff]  }
 0x31f   : > { %3491 = vmatprep.subr.bf16.mxu1 %v5447_v61  ;;  %3941 = vmatpush1.bf16.msra.mxu0 %v5490_v63  ;;  %v5532_v61 = vld [vmem:[#allocation9 + $0x80] ss:$8 sps:$4 sm:$0xff]   ;;  %v5549_v63 = vld [vmem:[#allocation9 + $0x134] ss:$8 sps:$4 sm:$0xff]  }
 0x320   : > { %3942 = vmatprep.subr.bf16.mxu0 %v5495_v6  ;;  %v5547_v6 = vld [vmem:[#allocation9 + $0x130] ss:$8 sps:$4 sm:$0xff]  }
 0x322   : > { %3492 = vmatpush1.bf16.msra.mxu1 %v5445_v62  ;;  %v5537_v62 = vld [vmem:[#allocation9 + $0x174] ss:$8 sps:$4 sm:$0xff]  }
 0x323   : > { %3493 = vmatprep.subr.bf16.mxu1 %v5450_v0  ;;  %3943 = vmatpush1.bf16.msra.mxu0 %v5493_v11  ;;  %v5535_v0 = vld [vmem:[#allocation9 + $0x170] ss:$8 sps:$4 sm:$0xff]   ;;  %v5555_v11 = vld [vmem:[#allocation9 + $0x114] ss:$8 sps:$4 sm:$0xff]  }
 0x324   : > { %3944 = vmatprep.subr.bf16.mxu0 %v5498_v12  ;;  %v5553_v12 = vld [vmem:[#allocation9 + $0x110] ss:$8 sps:$4 sm:$0xff]  }
 0x326   : > { %3494 = vmatpush1.bf16.msra.mxu1 %v5448_v4  ;;  %v5546_v4 = vld [vmem:[#allocation9 + $0x144] ss:$8 sps:$4 sm:$0xff]  }
 0x327   : > { %3495 = vmatprep.subr.bf16.mxu1 %v5453_v5  ;;  %3945 = vmatpush1.bf16.msra.mxu0 %v5496_v15  ;;  %v5544_v5 = vld [vmem:[#allocation9 + $0x140] ss:$8 sps:$4 sm:$0xff]   ;;  %v5561_v15 = vld [vmem:[#allocation9 + $0x1f4] ss:$8 sps:$4 sm:$0xff]  }
 0x328   : > { %3946 = vmatprep.subr.bf16.mxu0 %v5501_v16  ;;  %v5559_v16 = vld [vmem:[#allocation9 + $0x1f0] ss:$8 sps:$4 sm:$0xff]  }
 0x32a   : > { %3496 = vmatpush1.bf16.msra.mxu1 %v5451_v7  ;;  %v5552_v7 = vld [vmem:[#allocation9 + $0x124] ss:$8 sps:$4 sm:$0xff]  }
 0x32b   : > { %3497 = vmatprep.subr.bf16.mxu1 %v5456_v8  ;;  %3947 = vmatpush1.bf16.msra.mxu0 %v5499_v19  ;;  %v5550_v8 = vld [vmem:[#allocation9 + $0x120] ss:$8 sps:$4 sm:$0xff]   ;;  %v5567_v19 = vld [vmem:[#allocation9 + $0x1d4] ss:$8 sps:$4 sm:$0xff]  }
 0x32c   : > { %3948 = vmatprep.subr.bf16.mxu0 %v5504_v20  ;;  %v5565_v20 = vld [vmem:[#allocation9 + $0x1d0] ss:$8 sps:$4 sm:$0xff]  }
 0x32e   : > { %3498 = vmatpush1.bf16.msra.mxu1 %v5454_v13  ;;  %v5558_v13 = vld [vmem:[#allocation9 + $0x104] ss:$8 sps:$4 sm:$0xff]  }
 0x32f   : > { %3499 = vmatprep.subr.bf16.mxu1 %v5459_v14  ;;  %3949 = vmatpush1.bf16.msra.mxu0 %v5502_v23  ;;  %v5556_v14 = vld [vmem:[#allocation9 + $0x100] ss:$8 sps:$4 sm:$0xff]   ;;  %v5573_v23 = vld [vmem:[#allocation9 + $0x1b4] ss:$8 sps:$4 sm:$0xff]  }
 0x330   : > { %3950 = vmatprep.subr.bf16.mxu0 %v5507_v24  ;;  %v5571_v24 = vld [vmem:[#allocation9 + $0x1b0] ss:$8 sps:$4 sm:$0xff]  }
 0x332   : > { %3500 = vmatpush1.bf16.msra.mxu1 %v5457_v17  ;;  %v5564_v17 = vld [vmem:[#allocation9 + $0x1e4] ss:$8 sps:$4 sm:$0xff]  }
 0x333   : > { %3501 = vmatprep.subr.bf16.mxu1 %v5462_v18  ;;  %3951 = vmatpush1.bf16.msra.mxu0 %v5505_v27  ;;  %v5562_v18 = vld [vmem:[#allocation9 + $0x1e0] ss:$8 sps:$4 sm:$0xff]   ;;  %v5579_v27 = vld [vmem:[#allocation9 + $0x194] ss:$8 sps:$4 sm:$0xff]  }
 0x334   : > { %3952 = vmatprep.subr.bf16.mxu0 %v5510_v28  ;;  %v5577_v28 = vld [vmem:[#allocation9 + $0x190] ss:$8 sps:$4 sm:$0xff]  }
 0x336   : > { %3502 = vmatpush1.bf16.msra.mxu1 %v5460_v21  ;;  %v5570_v21 = vld [vmem:[#allocation9 + $0x1c4] ss:$8 sps:$4 sm:$0xff]  }
 0x337   : > { %3503 = vmatprep.subr.bf16.mxu1 %v5465_v22  ;;  %3953 = vmatpush1.bf16.msra.mxu0 %v5508_v31  ;;  %v5568_v22 = vld [vmem:[#allocation9 + $0x1c0] ss:$8 sps:$4 sm:$0xff]  }
 0x338   : > { %3954 = vmatprep.subr.bf16.mxu0 %v5513_v34 }
 0x33a   : > { %3504 = vmatpush2.bf16.msra.mxu1 %v5463_v25  ;;  %v5576_v25 = vld [vmem:[#allocation9 + $0x1a4] ss:$8 sps:$4 sm:$0xff]  }
 0x33b   : > { %3505 = vmatprep.subr.bf16.mxu1 %v5468_v10  ;;  %3955 = vmatpush2.bf16.msra.mxu0 %v5511_v37  ;;  %v5574_v10 = vld [vmem:[#allocation9 + $0x1a0] ss:$8 sps:$4 sm:$0xff]  }
 0x33c   : > { %3956 = vmatprep.subr.bf16.mxu0 %v5516_v39 }
 0x33e   : > { %3506 = vmatpush2.bf16.msra.mxu1 %v5466_v29  ;;  %v5582_v29 = vld [vmem:[#allocation9 + $0x184] ss:$8 sps:$4 sm:$0xff]  }
 0x33f   : > { %3507 = vmatprep.subr.bf16.mxu1 %v5471_v30  ;;  %3957 = vmatpush2.bf16.msra.mxu0 %v5514_v42  ;;  %v5580_v30 = vld [vmem:[#allocation9 + $0x180] ss:$8 sps:$4 sm:$0xff]  }
 0x340   : > { %3958 = vmatprep.subr.bf16.mxu0 %v5519_v43 }
 0x342   : > { %3508 = vmatpush2.bf16.msra.mxu1 %v5469_v35  ;;  %v2696_v35 = vld [vmem:[%s6258_s6] sm:$0xf] }
 0x343   : > { %3509 = vmatprep.subr.bf16.mxu1 %v5474_v36  ;;  %3959 = vmatpush2.bf16.msra.mxu0 %v5517_v44  ;;  %v2705_v37 = vrot.slane %v2696_v35, %v6120_v32  ;;  %v2701_v39 = vrot.slane %v2696_v35, %v6129_v52 }
 0x344   : > { %3960 = vmatprep.subr.bf16.mxu0 %v5522_v38 }
 0x346   : > { %3510 = vmatpush2.bf16.msra.mxu1 %v5472_v40 }
 0x347   : > { %3511 = vmatprep.subr.bf16.mxu1 %v5477_v41  ;;  %3961 = vmatpush2.bf16.msra.mxu0 %v5520_v47 }
 0x348   : > { %3962 = vmatprep.subr.bf16.mxu0 %v5525_v48 }
 0x34a   : > { %3512 = vmatpush2.bf16.msra.mxu1 %v5475_v26 }
 0x34b   : > { %3513 = vmatprep.subr.bf16.mxu1 %v5480_v9  ;;  %3963 = vmatpush2.bf16.msra.mxu0 %v5523_v51 }
 0x34c   : > { %3964 = vmatprep.subr.bf16.mxu0 %v5528_v55 }
 0x34e   : > { %3514 = vmatpush2.bf16.msra.mxu1 %v5478_v45 }
 0x34f   : > { %3515 = vmatprep.subr.bf16.mxu1 %v5483_v46  ;;  %3965 = vmatpush2.bf16.msra.mxu0 %v5526_v56 }
 0x350   : > { %3966 = vmatprep.subr.bf16.mxu0 %v5531_v57 }
 0x352   : > { %3516 = vmatpush2.bf16.msra.mxu1 %v5481_v49 }
 0x353   : > { %3517 = vmatprep.subr.bf16.mxu1 %v5486_v50  ;;  %3967 = vmatpush2.bf16.msra.mxu0 %v5529_v59 }
 0x354   : > { %3968 = vmatprep.subr.bf16.mxu0 %v5534_v60 }
 0x356   : > { %3518 = vmatpush2.bf16.msra.mxu1 %v5484_v54 }
 0x357   : > { %3969 = vmatpush2.bf16.msra.mxu0 %v5532_v61  ;;  %3981 = vmatprep.subr.bf16.mxu1 %v5537_v62  ;;  %v2713_v62 = vrot.slane %v2696_v35, %v6122_v33 }
 0x359   : > { %3520 = vmatmul.mubr.bf16.vlgmr.msra.gmra.mxu1 %v6159_v58  ;;  %v5543_v58 = vld [vmem:[#allocation9 + $0x154] ss:$8 sps:$4 sm:$0xff]  }
 0x35a   : > { %3982 = vmatpush1.bf16.msra.mxu1 %v5535_v0  ;;  %v2709_v0 = vrot.slane %v2696_v35, %v6131_v53  ;;  %v5583_v53 = vld [vmem:[%s6261_s9 + $0x78] sm:$0xff]   ;;  %v5598_v35 = vld [vmem:[%s6261_s9] sm:$0xff]  }
 0x35b   : > { %3983 = vmatprep.subr.bf16.mxu1 %v5540_v1  ;;  %4811 = vmatprep.subr.bf16.mxu0 %v5583_v53 }
 0x35e   : > { %3984 = vmatpush1.bf16.msra.mxu1 %v5538_v2 }
 0x35f   : > { %3985 = vmatprep.subr.bf16.mxu1 %v5543_v58 }
 0x362   : > { %3986 = vmatpush1.bf16.msra.mxu1 %v5541_v3 }
 0x363   : > { %3987 = vmatprep.subr.bf16.mxu1 %v5546_v4 }
 0x366   : > { %3988 = vmatpush1.bf16.msra.mxu1 %v5544_v5 }
 0x367   : > { %3989 = vmatprep.subr.bf16.mxu1 %v5549_v63 }
 0x36a   : > { %3990 = vmatpush1.bf16.msra.mxu1 %v5547_v6 }
 0x36b   : > { %3991 = vmatprep.subr.bf16.mxu1 %v5552_v7 }
 0x36e   : > { %3992 = vmatpush1.bf16.msra.mxu1 %v5550_v8 }
 0x36f   : > { %3993 = vmatprep.subr.bf16.mxu1 %v5555_v11 }
 0x372   : > { %3994 = vmatpush1.bf16.msra.mxu1 %v5553_v12 }
 0x373   : > { %3995 = vmatprep.subr.bf16.mxu1 %v5558_v13 }
 0x376   : > { %3996 = vmatpush1.bf16.msra.mxu1 %v5556_v14 }
 0x377   : > { %3997 = vmatprep.subr.bf16.mxu1 %v5561_v15 }
 0x37a   : > { %3998 = vmatpush2.bf16.msra.mxu1 %v5559_v16 }
 0x37b   : > { %3999 = vmatprep.subr.bf16.mxu1 %v5564_v17 }
 0x37e   : > { %4000 = vmatpush2.bf16.msra.mxu1 %v5562_v18 }
 0x37f   : > { %4001 = vmatprep.subr.bf16.mxu1 %v5567_v19  ;;  %v5584_v19 = vld [vmem:[%s6261_s9 + $0x38] sm:$0xff]  }
 0x382   : > { %4002 = vmatpush2.bf16.msra.mxu1 %v5565_v20  ;;  %v5585_v20 = vld [vmem:[%s6261_s9 + $0x70] sm:$0xff]  }
 0x383   : > { %4003 = vmatprep.subr.bf16.mxu1 %v5570_v21  ;;  %v5586_v21 = vld [vmem:[%s6261_s9 + $0x30] sm:$0xff]  }
 0x386   : > { %4004 = vmatpush2.bf16.msra.mxu1 %v5568_v22  ;;  %v5587_v22 = vld [vmem:[%s6261_s9 + $0x68] sm:$0xff]  }
 0x387   : > { %4005 = vmatprep.subr.bf16.mxu1 %v5573_v23  ;;  %v5588_v23 = vld [vmem:[%s6261_s9 + $0x28] sm:$0xff]  }
 0x38a   : > { %4006 = vmatpush2.bf16.msra.mxu1 %v5571_v24  ;;  %v5589_v24 = vld [vmem:[%s6261_s9 + $0x60] sm:$0xff]  }
 0x38b   : > { %4007 = vmatprep.subr.bf16.mxu1 %v5576_v25  ;;  %v5590_v25 = vld [vmem:[%s6261_s9 + $0x20] sm:$0xff]  }
 0x38e   : > { %4008 = vmatpush2.bf16.msra.mxu1 %v5574_v10  ;;  %v5591_v10 = vld [vmem:[%s6261_s9 + $0x58] sm:$0xff]  }
 0x38f   : > { %4009 = vmatprep.subr.bf16.mxu1 %v5579_v27  ;;  %v5592_v27 = vld [vmem:[%s6261_s9 + $0x18] sm:$0xff]  }
 0x392   : > { %4010 = vmatpush2.bf16.msra.mxu1 %v5577_v28  ;;  %v5593_v28 = vld [vmem:[%s6261_s9 + $0x50] sm:$0xff]  }
 0x393   : > { %4011 = vmatprep.subr.bf16.mxu1 %v5582_v29  ;;  %v5594_v29 = vld [vmem:[%s6261_s9 + $0x10] sm:$0xff]  }
 0x396   : > { %4012 = vmatpush2.bf16.msra.mxu1 %v5580_v30  ;;  %v5595_v30 = vld [vmem:[%s6261_s9 + $0x48] sm:$0xff]  }
 0x399   : > { %v3392_v31 = vpop.f32.mrf.mxu0 }
 0x39a   : > { %v3393_v9 = vadd.f32 %v3392_v31, %v2701_v39  ;;  %v5596_v31 = vld [vmem:[%s6261_s9 + $0x8] sm:$0xff]  }
 0x39b   : > { %v3394_v34 = vpop.f32.mrf.mxu0 }
 0x39c   : > { %v3395_v43 = vadd.f32 %v3394_v34, %v2705_v37  ;;  %v5597_v34 = vld [vmem:[%s6261_s9 + $0x40] sm:$0xff]  }
 0x39d   : > { %v3396_v36 = vpop.f32.mrf.mxu0 }
 0x39e   : > { %v3397_v26 = vadd.f32 %v3396_v36, %v2701_v39  ;;  %v3606_v39 = vld [vmem:[%s6260_s8] sm:$0x3] }
 0x39f   : > { %v3398_v41 = vpop.f32.mrf.mxu0 }
 0x3a0   : > { %v3399_v38 = vadd.f32 %v3398_v41, %v2705_v37  ;;  %v3615_v41 = vrot.slane %v3606_v39, %v6120_v32 }
 0x3d9   : > { %v3435_v40 = vpop.f32.mrf.mxu1  ;;  %v3478_v59 = vpop.f32.mrf.mxu0 }
 0x3da   : > { %v3436_v47 = vadd.f32 %v3435_v40, %v3393_v9  ;;  %v3479_v5 = vadd.f32 %v3478_v59, %v2709_v0 }
 0x3db   : > { %v3437_v42 = vpop.f32.mrf.mxu1  ;;  %v3480_v60 = vpop.f32.mrf.mxu0 }
 0x3dc   : > { %v3438_v45 = vadd.f32 %v3437_v42, %v3395_v43  ;;  %v3530_v55 = vmax.f32 %v3436_v47, 0.0  ;;  %v3481_v3 = vadd.f32 %v3480_v60, %v2713_v62  ;;  %v3611_v42 = vrot.slane %v3606_v39, %v6129_v52 }
 0x3dd   : > { %v3439_v44 = vpop.f32.mrf.mxu1  ;;  %v3482_v61 = vpop.f32.mrf.mxu0 }
 0x3de   : > { %v3440_v46 = vadd.f32 %v3439_v44, %v3397_v26  ;;  %v3531_v51 = vmax.f32 %v3438_v45, 0.0  ;;  %v3483_v4 = vadd.f32 %v3482_v61, %v2709_v0  ;;  %v4787_v61 = vld [vmem:[%s6262_s10] ss:$0 sm:$0xff] }
 0x3df   : > { %v3441_v48 = vpop.f32.mrf.mxu1  ;;  %v3484_v2 = vpop.f32.mrf.mxu0 }
 0x3e0   : > { %v3442_v49 = vadd.f32 %v3441_v48, %v3399_v38  ;;  %v3534_v50 = vmax.f32 %v3440_v46, 0.0  ;;  %v3485_v6 = vadd.f32 %v3484_v2, %v2713_v62 }
 0x3e2   : > { %v3535_v54 = vmax.f32 %v3442_v49, 0.0  ;;  %v3538_v57 = vpack.c.bf16 %v3534_v50, %v3530_v55 }
 0x3e4   : > { %v3539_v56 = vpack.c.bf16 %v3535_v54, %v3531_v51 }
 0x3e6   : > { %3970 = vmatprep.mubr.bf16.mxu0 %v3539_v56 }
 0x3e7   : > { %3971 = vmatmul.mubr.bf16.vlgmr.msra.gmra.mxu0 %v3538_v57 }
 0x3e8   : > { %4812 = vmatpush3.bf16.msra.mxu0 %v5584_v19 }
 0x3e9   : > { %4813 = vmatprep.subr.bf16.mxu0 %v5585_v20 }
 0x3ec   : > { %4814 = vmatpush3.bf16.msra.mxu0 %v5586_v21 }
 0x3ed   : > { %4815 = vmatprep.subr.bf16.mxu0 %v5587_v22 }
 0x3f0   : > { %4816 = vmatpush3.bf16.msra.mxu0 %v5588_v23 }
 0x3f1   : > { %4817 = vmatprep.subr.bf16.mxu0 %v5589_v24 }
 0x3f4   : > { %4818 = vmatpush3.bf16.msra.mxu0 %v5590_v25 }
 0x3f5   : > { %4819 = vmatprep.subr.bf16.mxu0 %v5591_v10 }
 0x3f8   : > { %4820 = vmatpush3.bf16.msra.mxu0 %v5592_v27 }
 0x3f9   : > { %4821 = vmatprep.subr.bf16.mxu0 %v5593_v28 }
 0x3fc   : > { %4822 = vmatpush3.bf16.msra.mxu0 %v5594_v29 }
 0x3fd   : > { %4823 = vmatprep.subr.bf16.mxu0 %v5595_v30 }
 0x400   : > { %4824 = vmatpush3.bf16.msra.mxu0 %v5596_v31 }
 0x401   : > { %4825 = vmatprep.subr.bf16.mxu0 %v5597_v34 }
 0x404   : > { %4826 = vmatpush3.bf16.msra.mxu0 %v5598_v35 }
 0x419   : > { %v3521_v1 = vpop.f32.mrf.mxu1 }
 0x41a   : > { %v3522_v11 = vadd.f32 %v3521_v1, %v3479_v5  ;;  %v4804_v5 = vld [vmem:[%s6263_s11] ss:$0 sm:$0xff] }
 0x41b   : > { %v3523_v58 = vpop.f32.mrf.mxu1 }
 0x41c   : > { %v3524_v7 = vadd.f32 %v3523_v58, %v3481_v3  ;;  %v3532_v17 = vmax.f32 %v3522_v11, 0.0 }
 0x41d   : > { %v3525_v63 = vpop.f32.mrf.mxu1 }
 0x41e   : > { %v3526_v8 = vadd.f32 %v3525_v63, %v3483_v4  ;;  %v3533_v15 = vmax.f32 %v3524_v7, 0.0 }
 0x41f   : > { %v3527_v12 = vpop.f32.mrf.mxu1 }
 0x420   : > { %v3528_v13 = vadd.f32 %v3527_v12, %v3485_v6  ;;  %v3536_v14 = vmax.f32 %v3526_v8, 0.0  ;;  %v4805_v6 = vld [vmem:[%s6264_s12] ss:$0 sm:$0xff] }
 0x422   : > { %v3537_v16 = vmax.f32 %v3528_v13, 0.0  ;;  %v3540_v18 = vpack.c.bf16 %v3536_v14, %v3532_v17 }
 0x424   : > { %v3541_v33 = vpack.c.bf16 %v3537_v16, %v3533_v15 }
 0x426   : > { %4013 = vmatprep.mubr.bf16.mxu1 %v3541_v33 }
 0x427   : > { %4014 = vmatmul.mubr.bf16.vlgmr.msra.gmra.mxu1 %v3540_v18 }
 0x4a7   : > { %v3972_v36 = vpop.f32.mrf.mxu0 }
 0x4a8   : > { %v3973_v45 = vadd.f32 %v3972_v36, %v3611_v42 }
 0x4a9   : > { %v3974_v37 = vpop.f32.mrf.mxu0 }
 0x4aa   : > { %v3975_v44 = vadd.f32 %v3974_v37, %v3615_v41 }
 0x4ab   : > { %v3976_v40 = vpop.f32.mrf.mxu0 }
 0x4ac   : > { %v3977_v38 = vadd.f32 %v3976_v40, %v3611_v42 }
 0x4ad   : > { %v3978_v26 = vpop.f32.mrf.mxu0 }
 0x4ae   : > { %v3979_v47 = vadd.f32 %v3978_v26, %v3615_v41 }
 0x4e7   : > { %v4015_v43 = vpop.f32.mrf.mxu1 }
 0x4e8   : > { %v4016_v50 = vadd.f32 %v4015_v43, %v3973_v45 }
 0x4e9   : > { %v4017_v9 = vpop.f32.mrf.mxu1 }
 0x4ea   : > { %v4018_v48 = vadd.f32 %v4017_v9, %v3975_v44  ;;  %v4024_v59 = vmax.f32 %v4016_v50, 0.0 }
 0x4eb   : > { %v4019_v46 = vpop.f32.mrf.mxu1 }
 0x4ec   : > { %v4020_v49 = vadd.f32 %v4019_v46, %v3977_v38  ;;  %v4025_v56 = vmax.f32 %v4018_v48, 0.0 }
 0x4ed   : > { %v4021_v51 = vpop.f32.mrf.mxu1 }
 0x4ee   : > { %v4022_v54 = vadd.f32 %v4021_v51, %v3979_v47  ;;  %v4026_v55 = vmax.f32 %v4020_v49, 0.0 }
 0x4f0   : > { %v4027_v57 = vmax.f32 %v4022_v54, 0.0  ;;  %v4028_v60 = vpack.c.bf16 %v4026_v55, %v4024_v59 }
 0x4f2   : > { %v4029_v32 = vpack.c.bf16 %v4027_v57, %v4025_v56 }
 0x4f4   : > { %4197 = vmatprep.mubr.bf16.mxu0 %v4029_v32 }
 0x4f5   : > { %4198 = vmatmul.mubr.bf16.vlgmr.msra.gmra.mxu0 %v4028_v60 }
 0x5b5   : > { %v4827_v52 = vpop.f32.mrf.mxu0 }
 0x5b7   : > { %v4828_v62 = vpop.f32.mrf.mxu0 }
 0x5b8   : > { %v4829_v0 = vadd.f32 %v4828_v62, %v4827_v52 }
 0x5b9   : > { %v4830_v1 = vpop.f32.mrf.mxu0 }
 0x5ba   : > { %v4200_v2 = vadd.f32 %v4829_v0, %v4787_v61 }
 0x5bb   : > { %v4831_v58 = vpop.f32.mrf.mxu0 }
 0x5bc   : > { %5599 = vtanh.f32 %v4200_v2  ;;  %v4832_v3 = vadd.f32 %v4831_v58, %v4830_v1 }
 0x5be   : > { %v4203_v4 = vadd.f32 %v4832_v3, %v4787_v61 }
 0x5c0   : > { %5601 = vtanh.f32 %v4203_v4 }
 0x5c9   : > { %v5600_v63 = vpop.eup %5599 }
 0x5ca   : > { %v4215_v7 = vmul.f32 %v5600_v63, %v4804_v5 }
 0x5cc   : > { %v4224_v8 = vadd.f32 %v4805_v6, %v4215_v7 }
 0x5cd   : > { %v5602_v11 = vpop.eup %5601 }
 0x5ce   : > { %4226 = vst [vmem:[%s6288_s25] sm:$0xff] %v4224_v8  ;;  %v4216_v12 = vmul.f32 %v5602_v11, %v4804_v5 }
 0x5d0   : > { %v4225_v13 = vadd.f32 %v4805_v6, %v4216_v12 }
 0x5d2   : > { %4227 = vst [vmem:[%s6289_s14 + $0x8] sm:$0xff] %v4225_v13 }
 0x5d3 PF: > { %s6290_s28 = sld [smem:[#allocation14_spill]]  ;;  %s6292_s25 = smov %s5741_s26 }
 0x5d4   : > { %s6291_s17 = sld [smem:[#allocation15_spill]]  ;;  %s6293_s26 = smov %s5745_s27 }
 0x5d9   : > { %p25_p9 = scmp.ge.s32.totalorder %s6290_s28, 4  }
 0x5da   : > { %s6294_s27 = smov %s6291_s17 }
 0x5db   :  { %27 = sbr.rel (!%p25_p9) target bundleno = 8 (0x8), region = 159 }
 0x5e0   :  { %4239 = vsyncpa [#allocation5], 1 }
 0x5e1   :  { %4241 = vsyncpa [#allocation5 + $0x1], 1 }
 0x5e2   :  { %4242 = vsyncpa [#allocation7], 1 }
 0x5e3   :  { %4243 = vsyncpa [#allocation10], 1 }

</bundles_post_ra>
